<compile_context>
chip_gen: v7x
topology: tpu7x:2x2x1
jax: 0.10.0
libtpu: 0.0.40
codegen_flags: <defaults>
</compile_context>

<pallas_src>
import jax
import jax.numpy as jnp
from jax.experimental import pallas as pl
from jax.experimental.pallas import tpu as pltpu


def _ffn_kernel(x_ref, w1_ref, b1_ref, w2_ref, b2_ref, o_ref, acc_ref):
    # x_ref:  (tm, E)  f32          w1_ref: (E, th)  bf16   b1_ref: (1, th) f32
    # w2_ref: (th, E)  bf16         b2_ref: (1, E)   f32
    # o_ref:  (tm, E)  f32          acc_ref: (tm, E) f32 scratch
    k = pl.program_id(1)

    @pl.when(k == 0)
    def _():
        acc_ref[...] = jnp.zeros_like(acc_ref)

    # First linear (partial over this hidden chunk): bf16 operands -> f32 acc.
    x = x_ref[...].astype(jnp.bfloat16)
    h = jnp.dot(x, w1_ref[...], preferred_element_type=jnp.float32) + b1_ref[...]

    # GELU (tanh approximation, exactly as the reference module), in f32.
    c = jnp.sqrt(jnp.float32(2.0 / jnp.pi))
    g = 0.5 * h * (1.0 + jnp.tanh(c * (h + 0.044715 * h * h * h)))

    # Second linear: partial contribution of this hidden chunk, accumulate f32.
    acc_ref[...] += jnp.dot(
        g.astype(jnp.bfloat16), w2_ref[...], preferred_element_type=jnp.float32
    )

    @pl.when(k == pl.num_programs(1) - 1)
    def _():
        o_ref[...] = (acc_ref[...] + b2_ref[...]).astype(o_ref.dtype)


def _round_up(a, b):
    return ((a + b - 1) // b) * b


def feed_forward(x, w1, b1, w2, b2, *, tm=256, th=512):
    """x: (B, T, E) f32. w1: (E, H), b1: (H,), w2: (H, E), b2: (E,); H = 4*E."""
    B, T, E = x.shape
    H = w1.shape[1]
    M = B * T

    # Row tile: multiple of 8 (f32 sublanes), no larger than the padded row count.
    tm = min(tm, _round_up(M, 8))
    M_pad = _round_up(M, tm)

    # Hidden tile must evenly divide H (a ragged weight block would pollute the
    # accumulator); pick the largest multiple-of-128 divisor <= th, else full H.
    if H % th != 0:
        cand = [t for t in range(th - (th % 128), 0, -128) if t > 0 and H % t == 0]
        th = cand[0] if cand else H

    x2d = x.reshape(M, E)
    if M_pad != M:
        # Zero-pad extra rows (zeros pass safely through tanh; never sliced back out).
        x2d = jnp.pad(x2d, ((0, M_pad - M), (0, 0)))

    # bf16 weights: MXU-native on all generations, halves streamed weight bytes.
    w1_bf = w1.astype(jnp.bfloat16)
    w2_bf = w2.astype(jnp.bfloat16)
    b1_2d = b1.reshape(1, H).astype(jnp.float32)
    b2_2d = b2.reshape(1, E).astype(jnp.float32)

    grid = (M_pad // tm, H // th)

    cost = pl.CostEstimate(
        flops=4 * M_pad * E * H,                 # two matmuls
        transcendentals=M_pad * H,               # tanh per hidden element
        bytes_accessed=(x2d.size * 4 + w1_bf.size * 2 + w2_bf.size * 2
                        + b1_2d.size * 4 + b2_2d.size * 4 + M_pad * E * 4),
    )

    out2d = pl.pallas_call(
        _ffn_kernel,
        out_shape=jax.ShapeDtypeStruct((M_pad, E), x.dtype),
        grid_spec=pltpu.PrefetchScalarGridSpec(
            num_scalar_prefetch=0,
            grid=grid,
            in_specs=[
                pl.BlockSpec((tm, E), lambda i, k: (i, 0)),   # x tile (resident over k)
                pl.BlockSpec((E, th), lambda i, k: (0, k)),   # W1 column chunk
                pl.BlockSpec((1, th), lambda i, k: (0, k)),   # b1 chunk
                pl.BlockSpec((th, E), lambda i, k: (k, 0)),   # W2 row chunk
                pl.BlockSpec((1, E), lambda i, k: (0, 0)),    # b2 (resident)
            ],
            out_specs=pl.BlockSpec((tm, E), lambda i, k: (i, 0)),
            scratch_shapes=[pltpu.VMEM((tm, E), jnp.float32)],
        ),
        compiler_params=pltpu.CompilerParams(
            dimension_semantics=("parallel", "arbitrary"),
        ),
        cost_estimate=cost,
    )(x2d, w1_bf, b1_2d, w2_bf, b2_2d)

    return out2d[:M].reshape(B, T, E)


def _reference(x, w1, b1, w2, b2):
    h = x @ w1 + b1
    g = 0.5 * h * (1.0 + jnp.tanh(jnp.sqrt(2.0 / jnp.pi) * (h + 0.044715 * h ** 3)))
    return g @ w2 + b2


if __name__ == "__main__":
    # Shapes matching the module spec: x = (2, 3, 768), emb_dim=768 -> hidden=3072.
    B, T, E = 2, 3, 768
    H = 4 * E

    key = jax.random.PRNGKey(0)
    kx, k1, k2, k3, k4 = jax.random.split(key, 5)

    x = jax.random.uniform(kx, (B, T, E), dtype=jnp.float32)
    w1 = jax.random.normal(k1, (E, H), dtype=jnp.float32) * (1.0 / jnp.sqrt(E))
    b1 = jax.random.normal(k2, (H,), dtype=jnp.float32) * 0.01
    w2 = jax.random.normal(k3, (H, E), dtype=jnp.float32) * (1.0 / jnp.sqrt(H))
    b2 = jax.random.normal(k4, (E,), dtype=jnp.float32) * 0.01

    out = feed_forward(x, w1, b1, w2, b2)   # exercises row padding + 6-step k grid
    out = jax.block_until_ready(out)

    ref = _reference(x, w1, b1, w2, b2)
    assert out.shape == (B, T, E)
    # bf16 matmul operands -> ~1e-2-level relative error vs the f32 reference.
    assert jnp.allclose(out, ref, atol=3e-2, rtol=3e-2)

    print("KERNEL_OK")
</pallas_src>

<mosaic_0001>
module attributes {stable_mosaic.version = 11 : i64} {
  func.func @_ffn_kernel(%arg0: i32, %arg1: i32, %arg2: memref<8x768xf32, #tpu.memory_space<vmem>>, %arg3: memref<768x512xbf16, #tpu.memory_space<vmem>>, %arg4: memref<1x512xf32, #tpu.memory_space<vmem>>, %arg5: memref<512x768xbf16, #tpu.memory_space<vmem>>, %arg6: memref<1x768xf32, #tpu.memory_space<vmem>>, %arg7: memref<8x768xf32, #tpu.memory_space<vmem>>, %arg8: memref<8x768xf32, #tpu.memory_space<vmem>>) attributes {dimension_semantics = [#tpu.dimension_semantics<parallel>, #tpu.dimension_semantics<arbitrary>], iteration_bounds = array<i64: 1, 6>, scalar_prefetch = 0 : i64, scratch_operands = 1 : i64, tpu.core_type = #tpu.core_type<tc>, window_params = [{transform_indices = @transform_0, window_bounds = array<i64: 8, 768>}, {transform_indices = @transform_1, window_bounds = array<i64: 768, 512>}, {transform_indices = @transform_2, window_bounds = array<i64: 1, 512>}, {transform_indices = @transform_3, window_bounds = array<i64: 512, 768>}, {pipeline_mode = #tpu.pipeline_mode<synchronous>, transform_indices = @transform_4, window_bounds = array<i64: 1, 768>}, {transform_indices = @transform_5, window_bounds = array<i64: 8, 768>}]} {
    %c0_i32 = arith.constant 0 : i32
    %0 = arith.cmpi eq, %arg1, %c0_i32 : i32
    %1 = arith.extui %0 : i1 to i32
    %c0_i32_0 = arith.constant 0 : i32
    %2 = arith.cmpi ne, %1, %c0_i32_0 : i32
    scf.if %2 {
      %cst_18 = arith.constant 0.000000e+00 : f32
      %33 = vector.broadcast %cst_18 : f32 to vector<8x768xf32>
      %c0_19 = arith.constant 0 : index
      %c0_20 = arith.constant 0 : index
      %34 = vector.load %arg8[%c0_19, %c0_20] : memref<8x768xf32, #tpu.memory_space<vmem>>, vector<8x768xf32>
      tpu.vector_store %arg8[%c0_19, %c0_20], %33 {strides = array<i32>} : memref<8x768xf32, #tpu.memory_space<vmem>>, vector<8x768xf32>,
    } else {
    }
    %c0 = arith.constant 0 : index
    %c0_1 = arith.constant 0 : index
    %3 = vector.load %arg2[%c0, %c0_1] : memref<8x768xf32, #tpu.memory_space<vmem>>, vector<8x768xf32>
    %4 = arith.truncf %3 : vector<8x768xf32> to vector<8x768xbf16>
    %c0_2 = arith.constant 0 : index
    %c0_3 = arith.constant 0 : index
    %5 = vector.load %arg3[%c0_2, %c0_3] : memref<768x512xbf16, #tpu.memory_space<vmem>>, vector<768x512xbf16>
    %cst = arith.constant dense<0.000000e+00> : vector<8x512xf32>
    %6 = tpu.matmul %4, %5, %cst {dimension_numbers = #tpu.dot_dimension_numbers<[1], [0], [0], [1], [0, 0, 1, 1], [], []>} : vector<8x768xbf16>, vector<768x512xbf16>, vector<8x512xf32> -> vector<8x512xf32>
    %c0_4 = arith.constant 0 : index
    %c0_5 = arith.constant 0 : index
    %7 = vector.load %arg4[%c0_4, %c0_5] : memref<1x512xf32, #tpu.memory_space<vmem>>, vector<1x512xf32>
    %8 = vector.broadcast %7 : vector<1x512xf32> to vector<8x512xf32>
    %9 = arith.addf %6, %8 : vector<8x512xf32>
    %cst_6 = arith.constant 0.636619746 : f32
    %10 = math.sqrt %cst_6 : f32
    %cst_7 = arith.constant 5.000000e-01 : f32
    %11 = vector.broadcast %cst_7 : f32 to vector<8x512xf32>
    %12 = arith.mulf %11, %9 : vector<8x512xf32>
    %cst_8 = arith.constant 4.471500e-02 : f32
    %13 = vector.broadcast %cst_8 : f32 to vector<8x512xf32>
    %14 = arith.mulf %13, %9 : vector<8x512xf32>
    %15 = arith.mulf %14, %9 : vector<8x512xf32>
    %16 = arith.mulf %15, %9 : vector<8x512xf32>
    %17 = arith.addf %9, %16 : vector<8x512xf32>
    %18 = vector.broadcast %10 : f32 to vector<8x512xf32>
    %19 = arith.mulf %18, %17 : vector<8x512xf32>
    %20 = math.tanh %19 : vector<8x512xf32>
    %cst_9 = arith.constant 1.000000e+00 : f32
    %21 = vector.broadcast %cst_9 : f32 to vector<8x512xf32>
    %22 = arith.addf %21, %20 : vector<8x512xf32>
    %23 = arith.mulf %12, %22 : vector<8x512xf32>
    %c0_10 = arith.constant 0 : index
    %c0_11 = arith.constant 0 : index
    %24 = vector.load %arg8[%c0_10, %c0_11] : memref<8x768xf32, #tpu.memory_space<vmem>>, vector<8x768xf32>
    %25 = arith.truncf %23 : vector<8x512xf32> to vector<8x512xbf16>
    %c0_12 = arith.constant 0 : index
    %c0_13 = arith.constant 0 : index
    %26 = vector.load %arg5[%c0_12, %c0_13] : memref<512x768xbf16, #tpu.memory_space<vmem>>, vector<512x768xbf16>
    %cst_14 = arith.constant dense<0.000000e+00> : vector<8x768xf32>
    %27 = tpu.matmul %25, %26, %cst_14 {dimension_numbers = #tpu.dot_dimension_numbers<[1], [0], [0], [1], [0, 0, 1, 1], [], []>} : vector<8x512xbf16>, vector<512x768xbf16>, vector<8x768xf32> -> vector<8x768xf32>
    %28 = arith.addf %24, %27 : vector<8x768xf32>
    %c0_15 = arith.constant 0 : index
    %c0_16 = arith.constant 0 : index
    %29 = vector.load %arg8[%c0_15, %c0_16] : memref<8x768xf32, #tpu.memory_space<vmem>>, vector<8x768xf32>
    tpu.vector_store %arg8[%c0_15, %c0_16], %28 {strides = array<i32>} : memref<8x768xf32, #tpu.memory_space<vmem>>, vector<8x768xf32>,
    %c5_i32 = arith.constant 5 : i32
    %30 = arith.cmpi eq, %arg1, %c5_i32 : i32
    %31 = arith.extui %30 : i1 to i32
    %c0_i32_17 = arith.constant 0 : i32
    %32 = arith.cmpi ne, %31, %c0_i32_17 : i32
    scf.if %32 {
      %c0_18 = arith.constant 0 : index
      %c0_19 = arith.constant 0 : index
      %33 = vector.load %arg8[%c0_18, %c0_19] : memref<8x768xf32, #tpu.memory_space<vmem>>, vector<8x768xf32>
      %c0_20 = arith.constant 0 : index
      %c0_21 = arith.constant 0 : index
      %34 = vector.load %arg6[%c0_20, %c0_21] : memref<1x768xf32, #tpu.memory_space<vmem>>, vector<1x768xf32>
      %35 = vector.broadcast %34 : vector<1x768xf32> to vector<8x768xf32>
      %36 = arith.addf %33, %35 : vector<8x768xf32>
      %c0_22 = arith.constant 0 : index
      %c0_23 = arith.constant 0 : index
      %37 = vector.load %arg7[%c0_22, %c0_23] : memref<8x768xf32, #tpu.memory_space<vmem>>, vector<8x768xf32>
      tpu.vector_store %arg7[%c0_22, %c0_23], %36 {strides = array<i32>} : memref<8x768xf32, #tpu.memory_space<vmem>>, vector<8x768xf32>,
    } else {
    }
    return
  }
  func.func @transform_0(%arg0: i32, %arg1: i32) -> (i32, i32) {
    %c0_i32 = arith.constant 0 : i32
    %c0_i32_0 = arith.constant 0 : i32
    return %arg0, %c0_i32 : i32, i32
  }
  func.func @transform_1(%arg0: i32, %arg1: i32) -> (i32, i32) {
    %c0_i32 = arith.constant 0 : i32
    %c0_i32_0 = arith.constant 0 : i32
    return %c0_i32, %arg1 : i32, i32
  }
  func.func @transform_2(%arg0: i32, %arg1: i32) -> (i32, i32) {
    %c0_i32 = arith.constant 0 : i32
    %c0_i32_0 = arith.constant 0 : i32
    return %c0_i32, %arg1 : i32, i32
  }
  func.func @transform_3(%arg0: i32, %arg1: i32) -> (i32, i32) {
    %c0_i32 = arith.constant 0 : i32
    %c0_i32_0 = arith.constant 0 : i32
    return %arg1, %c0_i32 : i32, i32
  }
  func.func @transform_4(%arg0: i32, %arg1: i32) -> (i32, i32) {
    %c0_i32 = arith.constant 0 : i32
    %c0_i32_0 = arith.constant 0 : i32
    %c0_i32_1 = arith.constant 0 : i32
    return %c0_i32, %c0_i32_0 : i32, i32
  }
  func.func @transform_5(%arg0: i32, %arg1: i32) -> (i32, i32) {
    %c0_i32 = arith.constant 0 : i32
    %c0_i32_0 = arith.constant 0 : i32
    return %arg0, %c0_i32 : i32, i32
  }
}

</mosaic_0001>

<bundles_post_ra>
// kernel: tpu_custom_call.1
= control target key start
LH: loop header
LB: loop body
LE: loop exit
PB: predicated region body
PF: predicated region fallthrough
CT: control target
= control target key end

     0   :  { %s5569_s0 = inlined_call_operand.hbm [shape: f32[8,768], index: 0, kind: input, shape index: {}]   ;;  %s5570_s1 = inlined_call_operand.hbm [shape: bf16[768,3072], index: 1, kind: input, shape index: {}]   ;;  %s5571_s2 = inlined_call_operand.hbm [shape: f32[1,3072], index: 2, kind: input, shape index: {}]   ;;  %s5572_s3 = inlined_call_operand.hbm [shape: bf16[3072,768], index: 3, kind: input, shape index: {}]   ;;  %s5573_s4 = inlined_call_operand.hbm [shape: f32[1,768], index: 4, kind: input, shape index: {}]   ;;  %s5574_s5 = inlined_call_operand.hbm [shape: f32[8,768], index: 5, kind: output, shape index: {}]  }
   0x1   :  { %5589 = sst [smem:[#allocation21_spill]] %s5570_s1 }
   0x2   :  { %5590 = sst [smem:[#allocation22_spill]] %s5573_s4 }
   0x3   :  { %5591 = sst [smem:[#allocation23_spill]] %s5574_s5 }
   0x4   :  { %10 = vsyncpa [#allocation4], 0 }
   0x5   :  { %11 = vsyncpa [#allocation7], 0 }
   0x6   :  { %13 = vsyncpa [#allocation7 + $0x1], 0 }
   0x7   :  { %14 = vsyncpa [#allocation10], 0 }
   0x8   :  { %16 = vsyncpa [#allocation10 + $0x1], 0 }
   0x9   :  { %17 = vsyncpa [#allocation5], 0  ;;  %s4847_s18 = smov 0   ;;  %s4849_s19 = smov 0  }
   0xa   :  { %s4851_s20 = smov 0   ;;  %s4853_s21 = smov 0  }
   0xb   :  { %s4855_s22 = smov 0   ;;  %s4857_s23 = smov 0  }
   0xc LB: > { %5592 = sst [smem:[#allocation18_spill]] %s4795_s21  ;;  %s4876_s24 = sadd.s32 4294967295, %s4803_s23   ;;  %s4803_s23 = sphi %s4857_s23, %s23_s23   ;;  %s4799_s22 = sphi %s4855_s22, %s5625_s22   ;;  %s4795_s21 = sphi %s4853_s21, %s5624_s21   ;;  %s4791_s20 = sphi %s4851_s20, %s5623_s20   ;;  %s4787_s19 = sphi %s4849_s19, %s5622_s19   ;;  %s4783_s18 = sphi %s4847_s18, %s5621_s18  }
   0xd   : > { %s68_s25 = sadd.s32 1, %s4791_s20  ;;  %p75_p0 = scmp.ne.s32.totalorder %s4791_s20, %s4787_s19 }
   0xe   : > { %p76_p1 = scmp.eq.s32.totalorder %s4803_s23, 0  ;;  %p81_p2 = scmp.ne.s32.totalorder %s4787_s19, %s4783_s18 }
   0xf   : > { %p5575_p3 = scmp.eq.s32.totalorder %s4876_s24, 0  ;;  %p3450_p5 = scmp.ge.s32.totalorder %s4803_s23, 1 }
  0x10   : > { %p77_p4 = por %p76_p1, %p75_p0  ;;  %p191_p7 = scmp.lt.s32.totalorder %s4803_s23, 7 }
  0x11   : > { %p4887_p6 = por %p5575_p3, %p81_p2  ;;  %s4805_s28 = smov [#allocation11]  }
  0x12   : > { %p4892_p8 = pnand %p3450_p5, %p191_p7  ;;  %s218_s29 = sshll.u32 %s4805_s28, 4  ;;  %s219_s29 = int_to_ptr.vmem [resolvable:$true] %s218_s29 }
  0x13   : > { %s5593_s26 = scalar_select %p4887_p6, 1, 0 }
  0x14   : > { %s5594_s27 = scalar_select %p4892_p8, 1, 0 }
  0x15   : > { %p3900_p9 = pneg %p4892_p8  ;;  %p3919_p10 = scmp.lt.s32.totalorder %s4803_s23, 6 }
  0x16   : > { %s5579_s30 = sand.u32 1, %s4803_s23   ;;  %s5597_s4 = sld [smem:[#allocation22_spill]] }
  0x17   : > { %p4902_p11 = pnand %p3900_p9, %p5575_p3  ;;  %p4906_p12 = pnand %p3919_p10, %p77_p4 }
  0x19   : > { %s5595_s6 = scalar_select %p4902_p11, 1, 0 }
  0x1a   : > { %s5596_s7 = scalar_select %p4906_p12, 1, 0 }
  0x1b   : > { %p5580_p0 = pneg %p4902_p11 }
  0x1c   : > { %s4565_s10 = scalar_lea.hbm %s5597_s4, 96 }
  0x1d   : > { %p4566_p13 = scmp.ne.s32.totalorder %s5597_s4, %s4565_s10  ;;  %p4572_p4 = scmp.lt.u32.totalorder %s4565_s10, %s5597_s4 }
  0x1f   : > { %p4568_p1 = pnand %p5580_p0, %p4566_p13 }
  0x21   : > { %p4569_p2 = pneg %p4568_p1 }
  0x23   : > { %p4574_p5 = pnand %p4572_p4, %p4569_p2 }
  0x25   : > { %4577 = shalt.err (!%p4574_p5)
}
  0x26   : > { %s4578_s15 = scalar_lea.vmem %s219_s29, 96  ;;  %p4586_p3 = scmp.lt.s32.totalorder %s219_s29, %s219_s29 }
  0x27   : > { %p4579_p7 = scmp.ne.s32.totalorder %s219_s29, %s4578_s15  ;;  %p4587_p6 = scmp.lt.s32.totalorder %s4578_s15, %s4578_s15 }
  0x29   : > { %p4581_p9 = pnand %p4579_p7, %p5580_p0  ;;  %p4588_p8 = por %p4587_p6, %p4586_p3 }
  0x2b   : > { %p4582_p10 = pneg %p4581_p9 }
  0x2d   : > { %p4589_p12 = pnand %p4588_p8, %p4582_p10 }
  0x2f   : > { %4592 = shalt.err (!%p4589_p12)
}
  0x30   : > { %3906 = dma.hbm_to_vmem [thread:$0]  (!%p4902_p11), %s5597_s4, 96, %s219_s29, [#allocation10]  }
  0x31   : > { %s32_s18 = sadd.s32 1, %s4799_s22  ;;  %s5583_s28 = sand.u32 1, %s4791_s20  }
  0x32   : > { %p33_p3 = scmp.ge.s32.totalorder %s32_s18, 6  ;;  %s4936_s8 = smul.u32 1536, %s5583_s28 }
  0x33   : > { %s3856_s9 = sshll.u32 %s4799_s22, 8  ;;  %s5599_s1 = sld [smem:[#allocation21_spill]] }
  0x34   : > { %s5627_s18 = smov (%p33_p3, %s32_s18), 0  ;;  %s233_s13 = scalar_lea.vmem [#allocation6], %s4936_s8 }
  0x35   : > { %5598 = sst [smem:[#allocation19_spill]] %s5627_s18  ;;  %s65_s29 = ssub.s32 %s4799_s22, %s5627_s18 }
  0x36   : > { %s240_s14 = sshll.u32 %s233_s13, 4  ;;  %p66_p6 = scmp.eq.s32.totalorder %s65_s29, 0  ;;  %s4949_s14 = int_to_ptr.vmem [resolvable:$true] %s240_s14 }
  0x37   : > { %s4958_s16 = scalar_lea.sflag [#allocation7], %s5579_s30  ;;  %p5601_p12 = scmp.ne.s32.totalorder %s5596_s7, 0 }
  0x38   : > { %s4954_s15 = scalar_select %p66_p6, %s4791_s20, %s68_s25  }
  0x39   : > { %s4944_s12 = scalar_lea.hbm %s5599_s1, %s3856_s9  ;;  %p4964_p13 = pneg %p5601_p12 }
  0x3a   : > { %5600 = sst [smem:[#allocation20_spill]] %s4954_s15  ;;  %s4593_s17 = scalar_lea.hbm %s4944_s12, 24576 }
  0x3b   : > { %p4594_p8 = scmp.ne.s32.totalorder %s4944_s12, %s4593_s17  ;;  %s4598_s29 = scalar_lea.hbm %s5599_s1, 147456 }
  0x3c   : > { %s5602_s9 = scalar_select %p4964_p13, 1, 0 }
  0x3d   : > { %p4596_p1 = pnand %p4964_p13, %p4594_p8  ;;  %p4599_p4 = scmp.lt.u32.totalorder %s4944_s12, %s5599_s1 }
  0x3e   : > { %p4600_p5 = scmp.lt.u32.totalorder %s4598_s29, %s4593_s17  ;;  %p4602_p9 = scmp.lt.u32.totalorder %s4593_s17, %s4944_s12 }
  0x3f   : > { %p4597_p2 = pneg %p4596_p1 }
  0x40   : > { %p4601_p7 = por %p4600_p5, %p4599_p4 }
  0x42   : > { %p4603_p10 = por %p4602_p9, %p4601_p7 }
  0x44   : > { %p4604_p3 = pnand %p4603_p10, %p4597_p2 }
  0x46   : > { %4607 = shalt.err (!%p4604_p3)
}
  0x47   : > { %s4608_s30 = scalar_lea.vmem %s4949_s14, 24576  ;;  %s4806_s10 = smov [#allocation6]  }
  0x48   : > { %p4609_p6 = scmp.ne.s32.totalorder %s4949_s14, %s4608_s30  ;;  %s4613_s11 = sshll.u32 %s4806_s10, 4  ;;  %s4614_s11 = int_to_ptr.vmem [resolvable:$false] %s4613_s11 }
  0x49   : > { %s4615_s25 = scalar_lea.vmem %s4614_s11, 49152  ;;  %p4616_p0 = scmp.lt.s32.totalorder %s4949_s14, %s4614_s11 }
  0x4a   : > { %p4611_p8 = pnand %p4609_p6, %p4964_p13  ;;  %p4617_p11 = scmp.lt.s32.totalorder %s4615_s25, %s4608_s30 }
  0x4c   : > { %p4612_p1 = pneg %p4611_p8  ;;  %p4618_p4 = por %p4617_p11, %p4616_p0 }
  0x4e   : > { %p4619_p5 = pnand %p4618_p4, %p4612_p1 }
  0x50   : > { %4622 = shalt.err (!%p4619_p5)
}
  0x51   : > { %s4807_s17 = smov 1536   ;;  %s4808_s29 = smov 256  }
  0x52   : > { %s4809_s13 = smov 16   ;;  %s4810_s28 = smov [#allocation3]  }
  0x53   : > { %3910 = dma.hbm_to_vmem [thread:$0]  (!%p5601_p12), %s4944_s12, 24576, %s4949_s14, %s4958_s16, %s4807_s17, %s4808_s29, %s4809_s13  }
  0x54   : > { %s207_s10 = sshll.u32 %s4810_s28, 4  ;;  %s5603_s1 = sand.u32 1, %s4791_s20   ;;  %s208_s10 = int_to_ptr.vmem [resolvable:$true] %s207_s10 }
  0x55   : > { %s3456_s11 = sshll.u32 %s5603_s1, 2  ;;  %s4623_s4 = scalar_lea.hbm %s5569_s0, 768 }
  0x56   : > { %p4624_p11 = scmp.ne.s32.totalorder %s5569_s0, %s4623_s4  ;;  %p5604_p0 = scmp.ne.s32.totalorder %s5595_s6, 0 }
  0x57   : > { %p4630_p10 = scmp.lt.u32.totalorder %s4623_s4, %s5569_s0 }
  0x58   : > { %p5605_p2 = pneg %p5604_p0 }
  0x5a   : > { %p4626_p7 = pnand %p4624_p11, %p5605_p2 }
  0x5c   : > { %p4627_p9 = pneg %p4626_p7 }
  0x5e   : > { %p4632_p3 = pnand %p4630_p10, %p4627_p9 }
  0x60   : > { %4635 = shalt.err (!%p4632_p3)
}
  0x61   : > { %s4636_s28 = scalar_lea.vmem %s208_s10, 768  ;;  %p5606_p8 = pmov %p5605_p2 }
  0x62   : > { %p4637_p6 = scmp.ne.s32.totalorder %s208_s10, %s4636_s28  ;;  %p4644_p5 = scmp.lt.s32.totalorder %s208_s10, %s208_s10 }
  0x63   : > { %p4645_p12 = scmp.lt.s32.totalorder %s4636_s28, %s4636_s28 }
  0x64   : > { %p4639_p1 = pnand %p4637_p6, %p5606_p8 }
  0x65   : > { %p4646_p13 = por %p4645_p12, %p4644_p5 }
  0x66   : > { %p4640_p4 = pneg %p4639_p1 }
  0x68   : > { %p4647_p2 = pnand %p4646_p13, %p4640_p4 }
  0x6a   : > { %4650 = shalt.err (!%p4647_p2)
}
  0x6b   : > { %3903 = dma.hbm_to_vmem [thread:$0]  (!%p5604_p0), %s5569_s0, 768, %s208_s10, [#allocation4]  }
  0x6c   : > { %s3857_s4 = sshll.u32 %s4799_s22, 6  ;;  %s254_s14 = scalar_lea.vmem [#allocation8], %s3456_s11 }
  0x6d   : > { %s5014_s12 = scalar_lea.hbm %s5571_s2, %s3857_s4  ;;  %s262_s15 = sshll.u32 %s254_s14, 4  ;;  %s263_s15 = int_to_ptr.vmem [resolvable:$true] %s262_s15 }
  0x6e   : > { %s4651_s6 = scalar_lea.hbm %s5014_s12, 64  ;;  %p5607_p13 = scmp.ne.s32.totalorder %s5602_s9, 0 }
  0x6f   : > { %p4652_p12 = scmp.ne.s32.totalorder %s5014_s12, %s4651_s6  ;;  %s4656_s13 = scalar_lea.hbm %s5571_s2, 384 }
  0x70   : > { %p4657_p0 = scmp.lt.u32.totalorder %s5014_s12, %s5571_s2  ;;  %p4658_p9 = scmp.lt.u32.totalorder %s4656_s13, %s4651_s6 }
  0x71   : > { %p4654_p11 = pnand %p4652_p12, %p5607_p13  ;;  %p4660_p3 = scmp.lt.u32.totalorder %s4651_s6, %s5014_s12 }
  0x72   : > { %p4659_p10 = por %p4658_p9, %p4657_p0 }
  0x73   : > { %p4655_p7 = pneg %p4654_p11 }
  0x74   : > { %p4661_p6 = por %p4660_p3, %p4659_p10 }
  0x76   : > { %p4662_p8 = pnand %p4661_p6, %p4655_p7 }
  0x78   : > { %4665 = shalt.err (!%p4662_p8)
}
  0x79   : > { %s4666_s11 = scalar_lea.vmem %s263_s15, 64  ;;  %s4811_s25 = smov [#allocation8]  }
  0x7a   : > { %p4667_p1 = scmp.ne.s32.totalorder %s263_s15, %s4666_s11  ;;  %s4671_s28 = sshll.u32 %s4811_s25, 4  ;;  %s4672_s28 = int_to_ptr.vmem [resolvable:$false] %s4671_s28 }
  0x7b   : > { %s4673_s1 = scalar_lea.vmem %s4672_s28, 128  ;;  %p4674_p2 = scmp.lt.s32.totalorder %s263_s15, %s4672_s28 }
  0x7c   : > { %p4669_p4 = pnand %p4667_p1, %p5607_p13  ;;  %p4675_p12 = scmp.lt.s32.totalorder %s4673_s1, %s4666_s11 }
  0x7e   : > { %p4670_p5 = pneg %p4669_p4  ;;  %p4676_p11 = por %p4675_p12, %p4674_p2 }
  0x80   : > { %p4677_p0 = pnand %p4676_p11, %p4670_p5 }
  0x82   : > { %4680 = shalt.err (!%p4677_p0)
}
  0x83   : > { %p5608_p9 = scmp.ne.s32.totalorder %s5596_s7, 0  ;;  %s3880_s18 = smul.u32 24576, %s4799_s22 }
  0x84   : > { %s273_s4 = scalar_lea.vmem [#allocation9], %s4936_s8  ;;  %s5609_s17 = sand.u32 1, %s4803_s23  }
  0x85   : > { %3913 = dma.hbm_to_vmem [thread:$0]  (!%p5608_p9), %s5014_s12, 64, %s263_s15, %s4958_s16  }
  0x86   : > { %s281_s5 = sshll.u32 %s273_s4, 4  ;;  %s5039_s6 = scalar_lea.hbm %s5572_s3, %s3880_s18  ;;  %s5041_s5 = int_to_ptr.vmem [resolvable:$true] %s281_s5 }
  0x87   : > { %s5045_s29 = scalar_lea.sflag [#allocation10], %s5609_s17  ;;  %s4681_s13 = scalar_lea.hbm %s5039_s6, 24576 }
  0x88   : > { %p4682_p7 = scmp.ne.s32.totalorder %s5039_s6, %s4681_s13  ;;  %s4686_s12 = scalar_lea.hbm %s5572_s3, 147456 }
  0x89   : > { %p4687_p6 = scmp.lt.u32.totalorder %s5039_s6, %s5572_s3  ;;  %p4688_p8 = scmp.lt.u32.totalorder %s4686_s12, %s4681_s13 }
  0x8a   : > { %p4684_p10 = pnand %p4682_p7, %p5607_p13  ;;  %p4690_p4 = scmp.lt.u32.totalorder %s4681_s13, %s5039_s6 }
  0x8b   : > { %p4689_p1 = por %p4688_p8, %p4687_p6 }
  0x8c   : > { %p4685_p3 = pneg %p4684_p10 }
  0x8d   : > { %p4691_p5 = por %p4690_p4, %p4689_p1 }
  0x8f   : > { %p4692_p2 = pnand %p4691_p5, %p4685_p3 }
  0x91   : > { %4695 = shalt.err (!%p4692_p2)
}
  0x92   : > { %s4696_s30 = scalar_lea.vmem %s5041_s5, 24576  ;;  %s4812_s11 = smov [#allocation9]  }
  0x93   : > { %p4697_p12 = scmp.ne.s32.totalorder %s5041_s5, %s4696_s30  ;;  %s4701_s25 = sshll.u32 %s4812_s11, 4  ;;  %s4702_s25 = int_to_ptr.vmem [resolvable:$false] %s4701_s25 }
  0x94   : > { %s4703_s28 = scalar_lea.vmem %s4702_s25, 49152  ;;  %p4704_p7 = scmp.lt.s32.totalorder %s5041_s5, %s4702_s25 }
  0x95   : > { %p4699_p11 = pnand %p4697_p12, %p5607_p13  ;;  %p4705_p10 = scmp.lt.s32.totalorder %s4703_s28, %s4696_s30 }
  0x97   : > { %p4700_p0 = pneg %p4699_p11  ;;  %p4706_p6 = por %p4705_p10, %p4704_p7 }
  0x99   : > { %p4707_p8 = pnand %p4706_p6, %p4700_p0 }
  0x9b   : > { %4710 = shalt.err (!%p4707_p8)
}
  0x9c   : > { %s4813_s1 = smov 384   ;;  %s4814_s18 = smov 24  }
  0x9d   : > { %3916 = dma.hbm_to_vmem [thread:$0]  (!%p5608_p9), %s5039_s6, 24576, %s5041_s5, %s5045_s29, %s4813_s1, %s4813_s1, %s4814_s18  }
  0x9e   : > { %p5610_p13 = scmp.ne.s32.totalorder %s5594_s27, 0 }
  0x9f   : > { %p5611_p3 = scmp.eq.s32.totalorder (!%p5610_p13), %s4876_s24, 0 }
  0xa0   : > { %293 = sbr.rel (%p5610_p13) target bundleno = 1018 (0x3fa), region = 40 }
  0xa7   : > { %4762 = dma.done.wait (%p5611_p3), [#allocation4], 768   ;;  %p5612_p1 = pmov %p5611_p3 }
  0xa8   : > { %s299_s9 = sand.u32 1, %s4876_s24   ;;  %s301_s4 = sand.u32 1, %s4787_s19  }
  0xa9   : > { %4764 = vsyncadd (%p5612_p1), [#allocation4], 4294966528  ;;  %s3881_s21 = smul.u32 1536, %s301_s4  ;;  %s300_s14 = scalar_lea.sflag [#allocation7], %s299_s9 }
  0xaa   : > { %p5613_p4 = scmp.ne.s32.totalorder %s5593_s26, 0 }
  0xab   : > { %s5077_s17 = scalar_lea.vmem [#allocation6], %s3881_s21 }
  0xac   : > { %4766 = dma.done.wait (%p5613_p4), %s300_s14, 24640  }
  0xad   : > { %4768 = vsyncadd (%p5613_p4), %s300_s14, 4294942656  ;;  %s5083_s27 = sshll.u32 %s301_s4, 2  ;;  %s318_s5 = scalar_lea.sflag [#allocation10], %s299_s9 }
  0xae   : > { %s312_s7 = scalar_lea.vmem [#allocation8], %s5083_s27  ;;  %s5086_s6 = scalar_lea.vmem [#allocation9], %s3881_s21 }
  0xaf   : > { %4770 = dma.done.wait (%p5613_p4), %s318_s5, 24576  }
  0xb0   : > { %4772 = vsyncadd (%p5613_p4), %s318_s5, 4294942720  ;;  %p5614_p9 = pmov %p5612_p1 }
  0xb1   : > { %p5615_p5 = pmov %p5612_p1 }
  0xb2   : > { %4774 = dma.done.wait (%p5614_p9), [#allocation10], 96  }
  0xb3   : > { %4776 = vsyncadd (%p5615_p5), [#allocation10], 4294967200  ;;  %s5616_s29 = sld [smem:[#allocation18_spill]] }
  0xb9   : > { %p3466_p2 = scmp.ne.s32.totalorder %s5616_s29, 0 }
  0xba   : > { %v4815_v0 = vmov (!%p3466_p2), 0.0  }
  0xbb   : > { %363 = sbr.rel (%p3466_p2) target bundleno = 194 (0xc2), region = 64  ;;  %364 = vst [vmem:[#allocation2] sm:$0xff] (!%p3466_p2), %v4815_v0  ;;  %365 = vst [vmem:[#allocation2 + $0x8] sm:$0xff] (!%p3466_p2), %v4815_v0 }
  0xbc   : > { %366 = vst [vmem:[#allocation2 + $0x10] sm:$0xff] (!%p3466_p2), %v4815_v0  ;;  %367 = vst [vmem:[#allocation2 + $0x18] sm:$0xff] (!%p3466_p2), %v4815_v0 }
  0xbd   : > { %368 = vst [vmem:[#allocation2 + $0x20] sm:$0xff] (!%p3466_p2), %v4815_v0  ;;  %369 = vst [vmem:[#allocation2 + $0x28] sm:$0xff] (!%p3466_p2), %v4815_v0 }
  0xc2 PF: > { %v3981_v1 = vld [vmem:[%s5077_s17 + $0x4] ss:$16 sps:$4 sm:$0xff]   ;;  %v3983_v2 = vld [vmem:[%s5077_s17 + $0xc] ss:$16 sps:$4 sm:$0xff]   ;;  %v3985_v3 = vld [vmem:[%s5077_s17] ss:$16 sps:$4 sm:$0xff]  }
  0xc3   : > { %1556 = vmatprep.subr.bf16.mxu0 %v3981_v1  ;;  %v3986_v4 = vld [vmem:[%s5077_s17 + $0x8] ss:$16 sps:$4 sm:$0xff]   ;;  %1679 = vmatprep.subr.bf16.mxu1 %v3983_v2  ;;  %v3987_v5 = vld [vmem:[%s5077_s17 + $0x24] ss:$16 sps:$4 sm:$0xff]   ;;  %v3989_v6 = vld [vmem:[%s5077_s17 + $0x2c] ss:$16 sps:$4 sm:$0xff]  }
  0xc4   : > { %1557 = vmatpush1.bf16.msra.mxu0 %v3985_v3  ;;  %1680 = vmatpush1.bf16.msra.mxu1 %v3986_v4  ;;  %v3991_v7 = vld [vmem:[%s5077_s17 + $0x20] ss:$16 sps:$4 sm:$0xff]   ;;  %v3992_v8 = vld [vmem:[%s5077_s17 + $0x28] ss:$16 sps:$4 sm:$0xff]   ;;  %v3993_v9 = vld [vmem:[%s5077_s17 + $0x44] ss:$16 sps:$4 sm:$0xff]  }
  0xc5   : > { %1558 = vmatprep.subr.bf16.mxu0 %v3987_v5  ;;  %1681 = vmatprep.subr.bf16.mxu1 %v3989_v6  ;;  %v3995_v10 = vld [vmem:[%s5077_s17 + $0x4c] ss:$16 sps:$4 sm:$0xff]   ;;  %v3997_v11 = vld [vmem:[%s5077_s17 + $0x40] ss:$16 sps:$4 sm:$0xff]   ;;  %v3998_v12 = vld [vmem:[%s5077_s17 + $0x48] ss:$16 sps:$4 sm:$0xff]  }
  0xc6   : > { %v3999_v13 = vld [vmem:[%s5077_s17 + $0x64] ss:$16 sps:$4 sm:$0xff]   ;;  %v4001_v14 = vld [vmem:[%s5077_s17 + $0x6c] ss:$16 sps:$4 sm:$0xff]   ;;  %v4003_v15 = vld [vmem:[%s5077_s17 + $0x60] ss:$16 sps:$4 sm:$0xff]  }
  0xc7   : > { %v4004_v16 = vld [vmem:[%s5077_s17 + $0x68] ss:$16 sps:$4 sm:$0xff]   ;;  %v4005_v17 = vld [vmem:[%s5077_s17 + $0x84] ss:$16 sps:$4 sm:$0xff]   ;;  %v4007_v18 = vld [vmem:[%s5077_s17 + $0x8c] ss:$16 sps:$4 sm:$0xff]  }
  0xc8   : > { %1559 = vmatpush1.bf16.msra.mxu0 %v3991_v7  ;;  %1682 = vmatpush1.bf16.msra.mxu1 %v3992_v8  ;;  %v4009_v19 = vld [vmem:[%s5077_s17 + $0x80] ss:$16 sps:$4 sm:$0xff]   ;;  %v4010_v20 = vld [vmem:[%s5077_s17 + $0x88] ss:$16 sps:$4 sm:$0xff]   ;;  %v4011_v21 = vld [vmem:[%s5077_s17 + $0xa4] ss:$16 sps:$4 sm:$0xff]  }
  0xc9   : > { %1560 = vmatprep.subr.bf16.mxu0 %v3993_v9  ;;  %1683 = vmatprep.subr.bf16.mxu1 %v3995_v10  ;;  %v4013_v22 = vld [vmem:[%s5077_s17 + $0xac] ss:$16 sps:$4 sm:$0xff]   ;;  %v4015_v23 = vld [vmem:[%s5077_s17 + $0xa0] ss:$16 sps:$4 sm:$0xff]   ;;  %v4016_v24 = vld [vmem:[%s5077_s17 + $0xa8] ss:$16 sps:$4 sm:$0xff]  }
  0xca   : > { %v4017_v25 = vld [vmem:[%s5077_s17 + $0xc4] ss:$16 sps:$4 sm:$0xff]   ;;  %v4019_v26 = vld [vmem:[%s5077_s17 + $0xcc] ss:$16 sps:$4 sm:$0xff]   ;;  %v4021_v27 = vld [vmem:[%s5077_s17 + $0xc0] ss:$16 sps:$4 sm:$0xff]  }
  0xcb   : > { %v4022_v28 = vld [vmem:[%s5077_s17 + $0xc8] ss:$16 sps:$4 sm:$0xff]   ;;  %v4023_v29 = vld [vmem:[%s5077_s17 + $0xe4] ss:$16 sps:$4 sm:$0xff]   ;;  %v4025_v30 = vld [vmem:[%s5077_s17 + $0xec] ss:$16 sps:$4 sm:$0xff]  }
  0xcc   : > { %1561 = vmatpush1.bf16.msra.mxu0 %v3997_v11  ;;  %1684 = vmatpush1.bf16.msra.mxu1 %v3998_v12  ;;  %v4027_v31 = vld [vmem:[%s5077_s17 + $0xe0] ss:$16 sps:$4 sm:$0xff]   ;;  %v4028_v32 = vld [vmem:[%s5077_s17 + $0xe8] ss:$16 sps:$4 sm:$0xff]   ;;  %v4029_v33 = vld [vmem:[%s5077_s17 + $0x104] ss:$16 sps:$4 sm:$0xff]  }
  0xcd   : > { %1562 = vmatprep.subr.bf16.mxu0 %v3999_v13  ;;  %1685 = vmatprep.subr.bf16.mxu1 %v4001_v14  ;;  %v4031_v34 = vld [vmem:[%s5077_s17 + $0x10c] ss:$16 sps:$4 sm:$0xff]   ;;  %v4033_v35 = vld [vmem:[%s5077_s17 + $0x100] ss:$16 sps:$4 sm:$0xff]   ;;  %v4034_v36 = vld [vmem:[%s5077_s17 + $0x108] ss:$16 sps:$4 sm:$0xff]  }
  0xce   : > { %v4035_v37 = vld [vmem:[%s5077_s17 + $0x124] ss:$16 sps:$4 sm:$0xff]   ;;  %v4037_v38 = vld [vmem:[%s5077_s17 + $0x12c] ss:$16 sps:$4 sm:$0xff]   ;;  %v4039_v39 = vld [vmem:[%s5077_s17 + $0x120] ss:$16 sps:$4 sm:$0xff]  }
  0xcf   : > { %v4040_v40 = vld [vmem:[%s5077_s17 + $0x128] ss:$16 sps:$4 sm:$0xff]   ;;  %v4041_v41 = vld [vmem:[%s5077_s17 + $0x144] ss:$16 sps:$4 sm:$0xff]   ;;  %v4043_v42 = vld [vmem:[%s5077_s17 + $0x14c] ss:$16 sps:$4 sm:$0xff]  }
  0xd0   : > { %1563 = vmatpush1.bf16.msra.mxu0 %v4003_v15  ;;  %1686 = vmatpush1.bf16.msra.mxu1 %v4004_v16  ;;  %v4045_v43 = vld [vmem:[%s5077_s17 + $0x140] ss:$16 sps:$4 sm:$0xff]   ;;  %v4046_v44 = vld [vmem:[%s5077_s17 + $0x148] ss:$16 sps:$4 sm:$0xff]   ;;  %v4047_v45 = vld [vmem:[%s5077_s17 + $0x164] ss:$16 sps:$4 sm:$0xff]  }
  0xd1   : > { %1564 = vmatprep.subr.bf16.mxu0 %v4005_v17  ;;  %1687 = vmatprep.subr.bf16.mxu1 %v4007_v18  ;;  %v4049_v46 = vld [vmem:[%s5077_s17 + $0x16c] ss:$16 sps:$4 sm:$0xff]   ;;  %v4051_v48 = vld [vmem:[%s5077_s17 + $0x160] ss:$16 sps:$4 sm:$0xff]   ;;  %v4052_v50 = vld [vmem:[%s5077_s17 + $0x168] ss:$16 sps:$4 sm:$0xff]  }
  0xd2   : > { %v371_v47 = vld [vmem:[#allocation3 + $0x8] sm:$0xff]  ;;  %v4053_v51 = vld [vmem:[%s5077_s17 + $0x184] ss:$16 sps:$4 sm:$0xff]   ;;  %v4057_v53 = vld [vmem:[%s5077_s17 + $0x180] ss:$16 sps:$4 sm:$0xff]   ;;  %s5617_s26 = sld [smem:[#allocation18_spill]] }
  0xd3   : > { %v377_v49 = vpack.c.bf16 %v371_v47, %v371_v47  ;;  %v4055_v52 = vld [vmem:[%s5077_s17 + $0x18c] ss:$16 sps:$4 sm:$0xff]   ;;  %v4058_v54 = vld [vmem:[%s5077_s17 + $0x188] ss:$16 sps:$4 sm:$0xff]   ;;  %v4059_v55 = vld [vmem:[%s5077_s17 + $0x1a4] ss:$16 sps:$4 sm:$0xff]  }
  0xd4   : > { %1565 = vmatpush1.bf16.msra.mxu0 %v4009_v19  ;;  %1688 = vmatpush1.bf16.msra.mxu1 %v4010_v20  ;;  %v4061_v56 = vld [vmem:[%s5077_s17 + $0x1ac] ss:$16 sps:$4 sm:$0xff]   ;;  %v4063_v57 = vld [vmem:[%s5077_s17 + $0x1a0] ss:$16 sps:$4 sm:$0xff]   ;;  %v4064_v58 = vld [vmem:[%s5077_s17 + $0x1a8] ss:$16 sps:$4 sm:$0xff]  }
  0xd5   : > { %1566 = vmatprep.subr.bf16.mxu0 %v4011_v21  ;;  %1689 = vmatprep.subr.bf16.mxu1 %v4013_v22  ;;  %v4065_v59 = vld [vmem:[%s5077_s17 + $0x1c4] ss:$16 sps:$4 sm:$0xff]   ;;  %v4067_v60 = vld [vmem:[%s5077_s17 + $0x1cc] ss:$16 sps:$4 sm:$0xff]   ;;  %v4069_v61 = vld [vmem:[%s5077_s17 + $0x1c0] ss:$16 sps:$4 sm:$0xff]  }
  0xd6   : > { %1588 = vmatprep.mubr.bf16.mxu0 %v377_v49  ;;  %1711 = vmatprep.mubr.bf16.mxu1 %v377_v49  ;;  %v4070_v62 = vld [vmem:[%s5077_s17 + $0x1c8] ss:$16 sps:$4 sm:$0xff]   ;;  %v4071_v63 = vld [vmem:[%s5077_s17 + $0x1e4] ss:$16 sps:$4 sm:$0xff]   ;;  %v4073_v0 = vld [vmem:[%s5077_s17 + $0x1ec] ss:$16 sps:$4 sm:$0xff]  }
  0xd7   : > { %v4075_v1 = vld [vmem:[%s5077_s17 + $0x1e0] ss:$16 sps:$4 sm:$0xff]   ;;  %v4076_v2 = vld [vmem:[%s5077_s17 + $0x1e8] ss:$16 sps:$4 sm:$0xff]   ;;  %v4079_v4 = vld [vmem:[%s5077_s17 + $0x204] ss:$16 sps:$4 sm:$0xff]  }
  0xd8   : > { %1567 = vmatpush1.bf16.msra.mxu0 %v4015_v23  ;;  %1690 = vmatpush1.bf16.msra.mxu1 %v4016_v24  ;;  %v370_v3 = vld [vmem:[#allocation3] sm:$0xff]  ;;  %v4082_v5 = vld [vmem:[%s5077_s17 + $0x20c] ss:$16 sps:$4 sm:$0xff]   ;;  %v4080_v8 = vld [vmem:[%s5077_s17 + $0x208] ss:$16 sps:$4 sm:$0xff]   ;;  %p3851_p12 = scmp.ne.s32.totalorder %s5617_s26, 5 }
  0xd9   : > { %1568 = vmatprep.subr.bf16.mxu0 %v4017_v25  ;;  %1691 = vmatprep.subr.bf16.mxu1 %v4019_v26  ;;  %v376_v6 = vpack.c.bf16 %v370_v3, %v370_v3  ;;  %v4077_v7 = vld [vmem:[%s5077_s17 + $0x200] ss:$16 sps:$4 sm:$0xff]   ;;  %v4085_v9 = vld [vmem:[%s5077_s17 + $0x224] ss:$16 sps:$4 sm:$0xff]   ;;  %v4088_v10 = vld [vmem:[%s5077_s17 + $0x22c] ss:$16 sps:$4 sm:$0xff]  }
  0xda   : > { %v4083_v11 = vld [vmem:[%s5077_s17 + $0x220] ss:$16 sps:$4 sm:$0xff]   ;;  %v4086_v12 = vld [vmem:[%s5077_s17 + $0x228] ss:$16 sps:$4 sm:$0xff]   ;;  %v4091_v13 = vld [vmem:[%s5077_s17 + $0x244] ss:$16 sps:$4 sm:$0xff]  }
  0xdb   : > { %v4094_v14 = vld [vmem:[%s5077_s17 + $0x24c] ss:$16 sps:$4 sm:$0xff]   ;;  %v4089_v15 = vld [vmem:[%s5077_s17 + $0x240] ss:$16 sps:$4 sm:$0xff]   ;;  %v4092_v16 = vld [vmem:[%s5077_s17 + $0x248] ss:$16 sps:$4 sm:$0xff]  }
  0xdc   : > { %1569 = vmatpush1.bf16.msra.mxu0 %v4021_v27  ;;  %1692 = vmatpush1.bf16.msra.mxu1 %v4022_v28  ;;  %v4097_v17 = vld [vmem:[%s5077_s17 + $0x264] ss:$16 sps:$4 sm:$0xff]   ;;  %v4100_v18 = vld [vmem:[%s5077_s17 + $0x26c] ss:$16 sps:$4 sm:$0xff]   ;;  %v4095_v19 = vld [vmem:[%s5077_s17 + $0x260] ss:$16 sps:$4 sm:$0xff]  }
  0xdd   : > { %1570 = vmatprep.subr.bf16.mxu0 %v4023_v29  ;;  %1693 = vmatprep.subr.bf16.mxu1 %v4025_v30  ;;  %v4098_v20 = vld [vmem:[%s5077_s17 + $0x268] ss:$16 sps:$4 sm:$0xff]   ;;  %v4103_v21 = vld [vmem:[%s5077_s17 + $0x284] ss:$16 sps:$4 sm:$0xff]   ;;  %v4106_v22 = vld [vmem:[%s5077_s17 + $0x28c] ss:$16 sps:$4 sm:$0xff]  }
  0xde   : > { %v4101_v23 = vld [vmem:[%s5077_s17 + $0x280] ss:$16 sps:$4 sm:$0xff]   ;;  %v4104_v24 = vld [vmem:[%s5077_s17 + $0x288] ss:$16 sps:$4 sm:$0xff]   ;;  %v4109_v25 = vld [vmem:[%s5077_s17 + $0x2a4] ss:$16 sps:$4 sm:$0xff]  }
  0xdf   : > { %v4112_v26 = vld [vmem:[%s5077_s17 + $0x2ac] ss:$16 sps:$4 sm:$0xff]   ;;  %v4107_v27 = vld [vmem:[%s5077_s17 + $0x2a0] ss:$16 sps:$4 sm:$0xff]   ;;  %v4110_v28 = vld [vmem:[%s5077_s17 + $0x2a8] ss:$16 sps:$4 sm:$0xff]  }
  0xe0   : > { %1571 = vmatpush1.bf16.msra.mxu0 %v4027_v31  ;;  %1694 = vmatpush1.bf16.msra.mxu1 %v4028_v32  ;;  %v4115_v29 = vld [vmem:[%s5077_s17 + $0x2c4] ss:$16 sps:$4 sm:$0xff]   ;;  %v4118_v30 = vld [vmem:[%s5077_s17 + $0x2cc] ss:$16 sps:$4 sm:$0xff]   ;;  %v4113_v32 = vld [vmem:[%s5077_s17 + $0x2c0] ss:$16 sps:$4 sm:$0xff]  }
  0xe1   : > { %1572 = vmatprep.subr.bf16.mxu0 %v4029_v33  ;;  %1695 = vmatprep.subr.bf16.mxu1 %v4031_v34  ;;  %v373_v31 = vld [vmem:[#allocation3 + $0x18] sm:$0xff]  ;;  %v4139_v47 = vld [vmem:[%s5077_s17 + $0x344] ss:$16 sps:$4 sm:$0xff]   ;;  %v4137_v49 = vld [vmem:[%s5077_s17 + $0x340] ss:$16 sps:$4 sm:$0xff]  }
  0xe2   : > { %v379_v33 = vpack.c.bf16 %v373_v31, %v373_v31  ;;  %v4116_v34 = vld [vmem:[%s5077_s17 + $0x2c8] ss:$16 sps:$4 sm:$0xff]   ;;  %v4169_v3 = vld [vmem:[%s5077_s17 + $0x3e4] ss:$16 sps:$4 sm:$0xff]  }
  0xe3   : > { %v4205_v31 = vld [vmem:[%s5077_s17 + $0x4a4] ss:$16 sps:$4 sm:$0xff]  }
  0xe4   : > { %1573 = vmatpush1.bf16.msra.mxu0 %v4033_v35  ;;  %1696 = vmatpush1.bf16.msra.mxu1 %v4034_v36  ;;  %v4121_v35 = vld [vmem:[%s5077_s17 + $0x2e4] ss:$16 sps:$4 sm:$0xff]   ;;  %v4124_v36 = vld [vmem:[%s5077_s17 + $0x2ec] ss:$16 sps:$4 sm:$0xff]  }
  0xe5   : > { %1574 = vmatprep.subr.bf16.mxu0 %v4035_v37  ;;  %1697 = vmatprep.subr.bf16.mxu1 %v4037_v38  ;;  %v4119_v37 = vld [vmem:[%s5077_s17 + $0x2e0] ss:$16 sps:$4 sm:$0xff]   ;;  %v4122_v38 = vld [vmem:[%s5077_s17 + $0x2e8] ss:$16 sps:$4 sm:$0xff]  }
  0xe8   : > { %1575 = vmatpush1.bf16.msra.mxu0 %v4039_v39  ;;  %1698 = vmatpush1.bf16.msra.mxu1 %v4040_v40  ;;  %v4127_v39 = vld [vmem:[%s5077_s17 + $0x304] ss:$16 sps:$4 sm:$0xff]   ;;  %v4130_v40 = vld [vmem:[%s5077_s17 + $0x30c] ss:$16 sps:$4 sm:$0xff]  }
  0xe9   : > { %1576 = vmatprep.subr.bf16.mxu0 %v4041_v41  ;;  %1699 = vmatprep.subr.bf16.mxu1 %v4043_v42  ;;  %v4125_v41 = vld [vmem:[%s5077_s17 + $0x300] ss:$16 sps:$4 sm:$0xff]   ;;  %v4128_v42 = vld [vmem:[%s5077_s17 + $0x308] ss:$16 sps:$4 sm:$0xff]  }
  0xec   : > { %1577 = vmatpush1.bf16.msra.mxu0 %v4045_v43  ;;  %1700 = vmatpush1.bf16.msra.mxu1 %v4046_v44  ;;  %v4133_v43 = vld [vmem:[%s5077_s17 + $0x324] ss:$16 sps:$4 sm:$0xff]   ;;  %v4136_v44 = vld [vmem:[%s5077_s17 + $0x32c] ss:$16 sps:$4 sm:$0xff]  }
  0xed   : > { %1578 = vmatprep.subr.bf16.mxu0 %v4047_v45  ;;  %1701 = vmatprep.subr.bf16.mxu1 %v4049_v46  ;;  %v4131_v45 = vld [vmem:[%s5077_s17 + $0x320] ss:$16 sps:$4 sm:$0xff]   ;;  %v4134_v46 = vld [vmem:[%s5077_s17 + $0x328] ss:$16 sps:$4 sm:$0xff]  }
  0xf0   : > { %1579 = vmatpush1.bf16.msra.mxu0 %v4051_v48  ;;  %1702 = vmatpush1.bf16.msra.mxu1 %v4052_v50  ;;  %v4142_v48 = vld [vmem:[%s5077_s17 + $0x34c] ss:$16 sps:$4 sm:$0xff]   ;;  %v4140_v50 = vld [vmem:[%s5077_s17 + $0x348] ss:$16 sps:$4 sm:$0xff]  }
  0xf1   : > { %1580 = vmatprep.subr.bf16.mxu0 %v4053_v51  ;;  %1703 = vmatprep.subr.bf16.mxu1 %v4055_v52  ;;  %v4145_v51 = vld [vmem:[%s5077_s17 + $0x364] ss:$16 sps:$4 sm:$0xff]   ;;  %v4148_v52 = vld [vmem:[%s5077_s17 + $0x36c] ss:$16 sps:$4 sm:$0xff]  }
  0xf4   : > { %1581 = vmatpush1.bf16.msra.mxu0 %v4057_v53  ;;  %1704 = vmatpush1.bf16.msra.mxu1 %v4058_v54  ;;  %v4143_v53 = vld [vmem:[%s5077_s17 + $0x360] ss:$16 sps:$4 sm:$0xff]   ;;  %v4146_v54 = vld [vmem:[%s5077_s17 + $0x368] ss:$16 sps:$4 sm:$0xff]  }
  0xf5   : > { %1582 = vmatprep.subr.bf16.mxu0 %v4059_v55  ;;  %1705 = vmatprep.subr.bf16.mxu1 %v4061_v56  ;;  %v4151_v55 = vld [vmem:[%s5077_s17 + $0x384] ss:$16 sps:$4 sm:$0xff]   ;;  %v4154_v56 = vld [vmem:[%s5077_s17 + $0x38c] ss:$16 sps:$4 sm:$0xff]  }
  0xf8   : > { %1583 = vmatpush1.bf16.msra.mxu0 %v4063_v57  ;;  %1706 = vmatpush1.bf16.msra.mxu1 %v4064_v58  ;;  %v4149_v57 = vld [vmem:[%s5077_s17 + $0x380] ss:$16 sps:$4 sm:$0xff]   ;;  %v4152_v58 = vld [vmem:[%s5077_s17 + $0x388] ss:$16 sps:$4 sm:$0xff]  }
  0xf9   : > { %1584 = vmatprep.subr.bf16.mxu0 %v4065_v59  ;;  %1707 = vmatprep.subr.bf16.mxu1 %v4067_v60  ;;  %v4157_v59 = vld [vmem:[%s5077_s17 + $0x3a4] ss:$16 sps:$4 sm:$0xff]   ;;  %v4160_v60 = vld [vmem:[%s5077_s17 + $0x3ac] ss:$16 sps:$4 sm:$0xff]  }
  0xfc   : > { %1585 = vmatpush1.bf16.msra.mxu0 %v4069_v61  ;;  %1708 = vmatpush1.bf16.msra.mxu1 %v4070_v62  ;;  %v4155_v61 = vld [vmem:[%s5077_s17 + $0x3a0] ss:$16 sps:$4 sm:$0xff]   ;;  %v4158_v62 = vld [vmem:[%s5077_s17 + $0x3a8] ss:$16 sps:$4 sm:$0xff]  }
  0xfd   : > { %1586 = vmatprep.subr.bf16.mxu0 %v4071_v63  ;;  %1709 = vmatprep.subr.bf16.mxu1 %v4073_v0  ;;  %v4163_v63 = vld [vmem:[%s5077_s17 + $0x3c4] ss:$16 sps:$4 sm:$0xff]   ;;  %v4166_v0 = vld [vmem:[%s5077_s17 + $0x3cc] ss:$16 sps:$4 sm:$0xff]  }
 0x100   : > { %1587 = vmatpush1.bf16.msra.mxu0 %v4075_v1  ;;  %1710 = vmatpush1.bf16.msra.mxu1 %v4076_v2  ;;  %v4161_v1 = vld [vmem:[%s5077_s17 + $0x3c0] ss:$16 sps:$4 sm:$0xff]   ;;  %v4164_v2 = vld [vmem:[%s5077_s17 + $0x3c8] ss:$16 sps:$4 sm:$0xff]  }
 0x101   : > { %1597 = vmatprep.subr.bf16.mxu0 %v4079_v4  ;;  %1720 = vmatprep.subr.bf16.mxu1 %v4082_v5  ;;  %v4172_v4 = vld [vmem:[%s5077_s17 + $0x3ec] ss:$16 sps:$4 sm:$0xff]   ;;  %v4167_v5 = vld [vmem:[%s5077_s17 + $0x3e0] ss:$16 sps:$4 sm:$0xff]  }
 0x103   : > { %1589 = vmatmul.mubr.bf16.vlgmr.msra.gmra.mrb[0].mxu0 %v376_v6  ;;  %1712 = vmatmul.mubr.bf16.vlgmr.msra.gmra.mrb[0].mxu1 %v376_v6  ;;  %v4170_v6 = vld [vmem:[%s5077_s17 + $0x3e8] ss:$16 sps:$4 sm:$0xff]  }
 0x104   : > { %1598 = vmatpush1.bf16.msra.mxu0 %v4077_v7  ;;  %1721 = vmatpush1.bf16.msra.mxu1 %v4080_v8  ;;  %v4175_v7 = vld [vmem:[%s5077_s17 + $0x404] ss:$16 sps:$4 sm:$0xff]  }
 0x105   : > { %1599 = vmatprep.subr.bf16.mxu0 %v4085_v9  ;;  %1722 = vmatprep.subr.bf16.mxu1 %v4088_v10  ;;  %v372_v8 = vld [vmem:[#allocation3 + $0x10] sm:$0xff]  ;;  %v4178_v9 = vld [vmem:[%s5077_s17 + $0x40c] ss:$16 sps:$4 sm:$0xff]  }
 0x106   : > { %1629 = vmatprep.mubr.bf16.mxu0 %v379_v33  ;;  %1752 = vmatprep.mubr.bf16.mxu1 %v379_v33  ;;  %v4173_v10 = vld [vmem:[%s5077_s17 + $0x400] ss:$16 sps:$4 sm:$0xff]  }
 0x107   : > { %v4203_v33 = vld [vmem:[%s5077_s17 + $0x4a0] ss:$16 sps:$4 sm:$0xff]  }
 0x108   : > { %1600 = vmatpush1.bf16.msra.mxu0 %v4083_v11  ;;  %1723 = vmatpush1.bf16.msra.mxu1 %v4086_v12  ;;  %v378_v11 = vpack.c.bf16 %v372_v8, %v372_v8  ;;  %v4176_v12 = vld [vmem:[%s5077_s17 + $0x408] ss:$16 sps:$4 sm:$0xff]   ;;  %v4268_v8 = vld [vmem:[%s5077_s17 + $0x5ec] ss:$16 sps:$4 sm:$0xff]  }
 0x109   : > { %1601 = vmatprep.subr.bf16.mxu0 %v4091_v13  ;;  %1724 = vmatprep.subr.bf16.mxu1 %v4094_v14  ;;  %v4181_v13 = vld [vmem:[%s5077_s17 + $0x424] ss:$16 sps:$4 sm:$0xff]   ;;  %v4184_v14 = vld [vmem:[%s5077_s17 + $0x42c] ss:$16 sps:$4 sm:$0xff]  }
 0x10c   : > { %1602 = vmatpush1.bf16.msra.mxu0 %v4089_v15  ;;  %1725 = vmatpush1.bf16.msra.mxu1 %v4092_v16  ;;  %v375_v15 = vld [vmem:[#allocation3 + $0x28] sm:$0xff] }
 0x10d   : > { %1603 = vmatprep.subr.bf16.mxu0 %v4097_v17  ;;  %1726 = vmatprep.subr.bf16.mxu1 %v4100_v18  ;;  %v381_v16 = vpack.c.bf16 %v375_v15, %v375_v15  ;;  %v4179_v17 = vld [vmem:[%s5077_s17 + $0x420] ss:$16 sps:$4 sm:$0xff]   ;;  %v4182_v18 = vld [vmem:[%s5077_s17 + $0x428] ss:$16 sps:$4 sm:$0xff]  }
 0x10e   : > { %v4272_v15 = vld [vmem:[%s5086_s6 + $0x300] ss:$24 sps:$4 sm:$0xff]  }
 0x110   : > { %1604 = vmatpush1.bf16.msra.mxu0 %v4095_v19  ;;  %1727 = vmatpush1.bf16.msra.mxu1 %v4098_v20  ;;  %v4187_v19 = vld [vmem:[%s5077_s17 + $0x444] ss:$16 sps:$4 sm:$0xff]   ;;  %v4190_v20 = vld [vmem:[%s5077_s17 + $0x44c] ss:$16 sps:$4 sm:$0xff]  }
 0x111   : > { %1605 = vmatprep.subr.bf16.mxu0 %v4103_v21  ;;  %1728 = vmatprep.subr.bf16.mxu1 %v4106_v22  ;;  %v4185_v21 = vld [vmem:[%s5077_s17 + $0x440] ss:$16 sps:$4 sm:$0xff]   ;;  %v4188_v22 = vld [vmem:[%s5077_s17 + $0x448] ss:$16 sps:$4 sm:$0xff]  }
 0x114   : > { %1606 = vmatpush1.bf16.msra.mxu0 %v4101_v23  ;;  %1729 = vmatpush1.bf16.msra.mxu1 %v4104_v24  ;;  %v4193_v23 = vld [vmem:[%s5077_s17 + $0x464] ss:$16 sps:$4 sm:$0xff]   ;;  %v4196_v24 = vld [vmem:[%s5077_s17 + $0x46c] ss:$16 sps:$4 sm:$0xff]  }
 0x115   : > { %1607 = vmatprep.subr.bf16.mxu0 %v4109_v25  ;;  %1730 = vmatprep.subr.bf16.mxu1 %v4112_v26  ;;  %v4191_v25 = vld [vmem:[%s5077_s17 + $0x460] ss:$16 sps:$4 sm:$0xff]   ;;  %v4194_v26 = vld [vmem:[%s5077_s17 + $0x468] ss:$16 sps:$4 sm:$0xff]  }
 0x118   : > { %1608 = vmatpush1.bf16.msra.mxu0 %v4107_v27  ;;  %1731 = vmatpush1.bf16.msra.mxu1 %v4110_v28  ;;  %v4199_v27 = vld [vmem:[%s5077_s17 + $0x484] ss:$16 sps:$4 sm:$0xff]   ;;  %v4202_v28 = vld [vmem:[%s5077_s17 + $0x48c] ss:$16 sps:$4 sm:$0xff]  }
 0x119   : > { %1609 = vmatprep.subr.bf16.mxu0 %v4115_v29  ;;  %1732 = vmatprep.subr.bf16.mxu1 %v4118_v30  ;;  %v4197_v29 = vld [vmem:[%s5077_s17 + $0x480] ss:$16 sps:$4 sm:$0xff]   ;;  %v4200_v30 = vld [vmem:[%s5077_s17 + $0x488] ss:$16 sps:$4 sm:$0xff]  }
 0x11c   : > { %1610 = vmatpush1.bf16.msra.mxu0 %v4113_v32  ;;  %1733 = vmatpush1.bf16.msra.mxu1 %v4116_v34  ;;  %v4208_v32 = vld [vmem:[%s5077_s17 + $0x4ac] ss:$16 sps:$4 sm:$0xff]   ;;  %v4206_v34 = vld [vmem:[%s5077_s17 + $0x4a8] ss:$16 sps:$4 sm:$0xff]  }
 0x11d   : > { %1611 = vmatprep.subr.bf16.mxu0 %v4121_v35  ;;  %1734 = vmatprep.subr.bf16.mxu1 %v4124_v36  ;;  %v4211_v35 = vld [vmem:[%s5077_s17 + $0x4c4] ss:$16 sps:$4 sm:$0xff]   ;;  %v4214_v36 = vld [vmem:[%s5077_s17 + $0x4cc] ss:$16 sps:$4 sm:$0xff]  }
 0x120   : > { %1612 = vmatpush1.bf16.msra.mxu0 %v4119_v37  ;;  %1735 = vmatpush1.bf16.msra.mxu1 %v4122_v38  ;;  %v4209_v37 = vld [vmem:[%s5077_s17 + $0x4c0] ss:$16 sps:$4 sm:$0xff]   ;;  %v4212_v38 = vld [vmem:[%s5077_s17 + $0x4c8] ss:$16 sps:$4 sm:$0xff]  }
 0x121   : > { %1613 = vmatprep.subr.bf16.mxu0 %v4127_v39  ;;  %1736 = vmatprep.subr.bf16.mxu1 %v4130_v40  ;;  %v4217_v39 = vld [vmem:[%s5077_s17 + $0x4e4] ss:$16 sps:$4 sm:$0xff]   ;;  %v4220_v40 = vld [vmem:[%s5077_s17 + $0x4ec] ss:$16 sps:$4 sm:$0xff]  }
 0x124   : > { %1614 = vmatpush1.bf16.msra.mxu0 %v4125_v41  ;;  %1737 = vmatpush1.bf16.msra.mxu1 %v4128_v42  ;;  %v4215_v41 = vld [vmem:[%s5077_s17 + $0x4e0] ss:$16 sps:$4 sm:$0xff]   ;;  %v4218_v42 = vld [vmem:[%s5077_s17 + $0x4e8] ss:$16 sps:$4 sm:$0xff]  }
 0x125   : > { %1615 = vmatprep.subr.bf16.mxu0 %v4133_v43  ;;  %1738 = vmatprep.subr.bf16.mxu1 %v4136_v44  ;;  %v4223_v43 = vld [vmem:[%s5077_s17 + $0x504] ss:$16 sps:$4 sm:$0xff]   ;;  %v4226_v44 = vld [vmem:[%s5077_s17 + $0x50c] ss:$16 sps:$4 sm:$0xff]  }
 0x128   : > { %1616 = vmatpush1.bf16.msra.mxu0 %v4131_v45  ;;  %1739 = vmatpush1.bf16.msra.mxu1 %v4134_v46  ;;  %v4221_v45 = vld [vmem:[%s5077_s17 + $0x500] ss:$16 sps:$4 sm:$0xff]   ;;  %v4224_v46 = vld [vmem:[%s5077_s17 + $0x508] ss:$16 sps:$4 sm:$0xff]  }
 0x129   : > { %1617 = vmatprep.subr.bf16.mxu0 %v4139_v47  ;;  %1740 = vmatprep.subr.bf16.mxu1 %v4142_v48  ;;  %v4229_v47 = vld [vmem:[%s5077_s17 + $0x524] ss:$16 sps:$4 sm:$0xff]   ;;  %v4232_v48 = vld [vmem:[%s5077_s17 + $0x52c] ss:$16 sps:$4 sm:$0xff]  }
 0x12c   : > { %1618 = vmatpush1.bf16.msra.mxu0 %v4137_v49  ;;  %1741 = vmatpush1.bf16.msra.mxu1 %v4140_v50  ;;  %v4227_v49 = vld [vmem:[%s5077_s17 + $0x520] ss:$16 sps:$4 sm:$0xff]   ;;  %v4230_v50 = vld [vmem:[%s5077_s17 + $0x528] ss:$16 sps:$4 sm:$0xff]  }
 0x12d   : > { %1619 = vmatprep.subr.bf16.mxu0 %v4145_v51  ;;  %1742 = vmatprep.subr.bf16.mxu1 %v4148_v52  ;;  %v4235_v51 = vld [vmem:[%s5077_s17 + $0x544] ss:$16 sps:$4 sm:$0xff]   ;;  %v4238_v52 = vld [vmem:[%s5077_s17 + $0x54c] ss:$16 sps:$4 sm:$0xff]  }
 0x130   : > { %1620 = vmatpush1.bf16.msra.mxu0 %v4143_v53  ;;  %1743 = vmatpush1.bf16.msra.mxu1 %v4146_v54  ;;  %v4233_v53 = vld [vmem:[%s5077_s17 + $0x540] ss:$16 sps:$4 sm:$0xff]   ;;  %v4236_v54 = vld [vmem:[%s5077_s17 + $0x548] ss:$16 sps:$4 sm:$0xff]  }
 0x131   : > { %1621 = vmatprep.subr.bf16.mxu0 %v4151_v55  ;;  %1744 = vmatprep.subr.bf16.mxu1 %v4154_v56  ;;  %v4241_v55 = vld [vmem:[%s5077_s17 + $0x564] ss:$16 sps:$4 sm:$0xff]   ;;  %v4244_v56 = vld [vmem:[%s5077_s17 + $0x56c] ss:$16 sps:$4 sm:$0xff]  }
 0x134   : > { %1622 = vmatpush1.bf16.msra.mxu0 %v4149_v57  ;;  %1745 = vmatpush1.bf16.msra.mxu1 %v4152_v58  ;;  %v4239_v57 = vld [vmem:[%s5077_s17 + $0x560] ss:$16 sps:$4 sm:$0xff]   ;;  %v4242_v58 = vld [vmem:[%s5077_s17 + $0x568] ss:$16 sps:$4 sm:$0xff]  }
 0x135   : > { %1623 = vmatprep.subr.bf16.mxu0 %v4157_v59  ;;  %1746 = vmatprep.subr.bf16.mxu1 %v4160_v60  ;;  %v4247_v59 = vld [vmem:[%s5077_s17 + $0x584] ss:$16 sps:$4 sm:$0xff]   ;;  %v4250_v60 = vld [vmem:[%s5077_s17 + $0x58c] ss:$16 sps:$4 sm:$0xff]  }
 0x138   : > { %1624 = vmatpush1.bf16.msra.mxu0 %v4155_v61  ;;  %1747 = vmatpush1.bf16.msra.mxu1 %v4158_v62  ;;  %v4245_v61 = vld [vmem:[%s5077_s17 + $0x580] ss:$16 sps:$4 sm:$0xff]   ;;  %v4248_v62 = vld [vmem:[%s5077_s17 + $0x588] ss:$16 sps:$4 sm:$0xff]  }
 0x139   : > { %1625 = vmatprep.subr.bf16.mxu0 %v4163_v63  ;;  %1748 = vmatprep.subr.bf16.mxu1 %v4166_v0  ;;  %v4253_v63 = vld [vmem:[%s5077_s17 + $0x5a4] ss:$16 sps:$4 sm:$0xff]   ;;  %v4256_v0 = vld [vmem:[%s5077_s17 + $0x5ac] ss:$16 sps:$4 sm:$0xff]  }
 0x13c   : > { %1626 = vmatpush1.bf16.msra.mxu0 %v4161_v1  ;;  %1749 = vmatpush1.bf16.msra.mxu1 %v4164_v2  ;;  %v4251_v1 = vld [vmem:[%s5077_s17 + $0x5a0] ss:$16 sps:$4 sm:$0xff]   ;;  %v4254_v2 = vld [vmem:[%s5077_s17 + $0x5a8] ss:$16 sps:$4 sm:$0xff]  }
 0x13d   : > { %1627 = vmatprep.subr.bf16.mxu0 %v4169_v3  ;;  %1750 = vmatprep.subr.bf16.mxu1 %v4172_v4  ;;  %v4259_v3 = vld [vmem:[%s5077_s17 + $0x5c4] ss:$16 sps:$4 sm:$0xff]   ;;  %v4262_v4 = vld [vmem:[%s5077_s17 + $0x5cc] ss:$16 sps:$4 sm:$0xff]  }
 0x140   : > { %1628 = vmatpush1.bf16.msra.mxu0 %v4167_v5  ;;  %1751 = vmatpush1.bf16.msra.mxu1 %v4170_v6  ;;  %v4257_v5 = vld [vmem:[%s5077_s17 + $0x5c0] ss:$16 sps:$4 sm:$0xff]   ;;  %v4260_v6 = vld [vmem:[%s5077_s17 + $0x5c8] ss:$16 sps:$4 sm:$0xff]  }
 0x141   : > { %1638 = vmatprep.subr.bf16.mxu0 %v4175_v7  ;;  %1761 = vmatprep.subr.bf16.mxu1 %v4178_v9  ;;  %v4265_v7 = vld [vmem:[%s5077_s17 + $0x5e4] ss:$16 sps:$4 sm:$0xff]   ;;  %v4263_v9 = vld [vmem:[%s5077_s17 + $0x5e0] ss:$16 sps:$4 sm:$0xff]  }
 0x143   : > { %1630 = vmatmul.mubr.bf16.vlgmr.msra.gmra.mrb[0].mxu0 %v378_v11  ;;  %1753 = vmatmul.mubr.bf16.vlgmr.msra.gmra.mrb[0].mxu1 %v378_v11  ;;  %v374_v11 = vld [vmem:[#allocation3 + $0x20] sm:$0xff] }
 0x144   : > { %1639 = vmatpush1.bf16.msra.mxu0 %v4173_v10  ;;  %1762 = vmatpush1.bf16.msra.mxu1 %v4176_v12  ;;  %v4266_v10 = vld [vmem:[%s5077_s17 + $0x5e8] ss:$16 sps:$4 sm:$0xff]   ;;  %v4271_v12 = vld [vmem:[%s5086_s6 + $0x4] ss:$24 sps:$4 sm:$0xff]  }
 0x145   : > { %1640 = vmatprep.subr.bf16.mxu0 %v4181_v13  ;;  %1763 = vmatprep.subr.bf16.mxu1 %v4184_v14  ;;  %v4274_v13 = vld [vmem:[%s5086_s6 + $0x304] ss:$24 sps:$4 sm:$0xff]   ;;  %v4269_v14 = vld [vmem:[%s5086_s6] ss:$24 sps:$4 sm:$0xff]  }
 0x146   : > { %1670 = vmatprep.mubr.bf16.mxu0 %v381_v16  ;;  %1793 = vmatprep.mubr.bf16.mxu1 %v381_v16  ;;  %v380_v16 = vpack.c.bf16 %v374_v11, %v374_v11  ;;  %v4359_v11 = vld [vmem:[%s5086_s6 + $0x2d0] ss:$24 sps:$4 sm:$0xff]  }
 0x148   : > { %1641 = vmatpush1.bf16.msra.mxu0 %v4179_v17  ;;  %1764 = vmatpush1.bf16.msra.mxu1 %v4182_v18  ;;  %v4277_v17 = vld [vmem:[%s5086_s6 + $0x34] ss:$24 sps:$4 sm:$0xff]  }
 0x149   : > { %1642 = vmatprep.subr.bf16.mxu0 %v4187_v19  ;;  %1765 = vmatprep.subr.bf16.mxu1 %v4190_v20  ;;  %v4280_v18 = vld [vmem:[%s5086_s6 + $0x334] ss:$24 sps:$4 sm:$0xff]   ;;  %v4275_v19 = vld [vmem:[%s5086_s6 + $0x30] ss:$24 sps:$4 sm:$0xff]  }
 0x14a   : > { %v4278_v20 = vld [vmem:[%s5086_s6 + $0x330] ss:$24 sps:$4 sm:$0xff]  }
 0x14c   : > { %1643 = vmatpush1.bf16.msra.mxu0 %v4185_v21  ;;  %1766 = vmatpush1.bf16.msra.mxu1 %v4188_v22  ;;  %v4283_v21 = vld [vmem:[%s5086_s6 + $0x64] ss:$24 sps:$4 sm:$0xff]  }
 0x14d   : > { %1644 = vmatprep.subr.bf16.mxu0 %v4193_v23  ;;  %1767 = vmatprep.subr.bf16.mxu1 %v4196_v24  ;;  %v4286_v22 = vld [vmem:[%s5086_s6 + $0x364] ss:$24 sps:$4 sm:$0xff]   ;;  %v4281_v23 = vld [vmem:[%s5086_s6 + $0x60] ss:$24 sps:$4 sm:$0xff]  }
 0x14e   : > { %v4284_v24 = vld [vmem:[%s5086_s6 + $0x360] ss:$24 sps:$4 sm:$0xff]  }
 0x150   : > { %1645 = vmatpush1.bf16.msra.mxu0 %v4191_v25  ;;  %1768 = vmatpush1.bf16.msra.mxu1 %v4194_v26  ;;  %v4289_v25 = vld [vmem:[%s5086_s6 + $0x94] ss:$24 sps:$4 sm:$0xff]  }
 0x151   : > { %1646 = vmatprep.subr.bf16.mxu0 %v4199_v27  ;;  %1769 = vmatprep.subr.bf16.mxu1 %v4202_v28  ;;  %v4292_v26 = vld [vmem:[%s5086_s6 + $0x394] ss:$24 sps:$4 sm:$0xff]   ;;  %v4287_v27 = vld [vmem:[%s5086_s6 + $0x90] ss:$24 sps:$4 sm:$0xff]  }
 0x152   : > { %v4290_v28 = vld [vmem:[%s5086_s6 + $0x390] ss:$24 sps:$4 sm:$0xff]  }
 0x154   : > { %1647 = vmatpush1.bf16.msra.mxu0 %v4197_v29  ;;  %1770 = vmatpush1.bf16.msra.mxu1 %v4200_v30  ;;  %v4295_v29 = vld [vmem:[%s5086_s6 + $0xc4] ss:$24 sps:$4 sm:$0xff]  }
 0x155   : > { %1648 = vmatprep.subr.bf16.mxu0 %v4205_v31  ;;  %1771 = vmatprep.subr.bf16.mxu1 %v4208_v32  ;;  %v4298_v30 = vld [vmem:[%s5086_s6 + $0x3c4] ss:$24 sps:$4 sm:$0xff]   ;;  %v4293_v31 = vld [vmem:[%s5086_s6 + $0xc0] ss:$24 sps:$4 sm:$0xff]  }
 0x156   : > { %v4296_v32 = vld [vmem:[%s5086_s6 + $0x3c0] ss:$24 sps:$4 sm:$0xff]  }
 0x158   : > { %1649 = vmatpush1.bf16.msra.mxu0 %v4203_v33  ;;  %1772 = vmatpush1.bf16.msra.mxu1 %v4206_v34  ;;  %v4301_v33 = vld [vmem:[%s5086_s6 + $0xf4] ss:$24 sps:$4 sm:$0xff]  }
 0x159   : > { %1650 = vmatprep.subr.bf16.mxu0 %v4211_v35  ;;  %1773 = vmatprep.subr.bf16.mxu1 %v4214_v36  ;;  %v4304_v34 = vld [vmem:[%s5086_s6 + $0x3f4] ss:$24 sps:$4 sm:$0xff]   ;;  %v4299_v35 = vld [vmem:[%s5086_s6 + $0xf0] ss:$24 sps:$4 sm:$0xff]  }
 0x15a   : > { %v4302_v36 = vld [vmem:[%s5086_s6 + $0x3f0] ss:$24 sps:$4 sm:$0xff]  }
 0x15c   : > { %1651 = vmatpush1.bf16.msra.mxu0 %v4209_v37  ;;  %1774 = vmatpush1.bf16.msra.mxu1 %v4212_v38  ;;  %v4307_v37 = vld [vmem:[%s5086_s6 + $0x124] ss:$24 sps:$4 sm:$0xff]  }
 0x15d   : > { %1652 = vmatprep.subr.bf16.mxu0 %v4217_v39  ;;  %1775 = vmatprep.subr.bf16.mxu1 %v4220_v40  ;;  %v4310_v38 = vld [vmem:[%s5086_s6 + $0x424] ss:$24 sps:$4 sm:$0xff]   ;;  %v4305_v39 = vld [vmem:[%s5086_s6 + $0x120] ss:$24 sps:$4 sm:$0xff]  }
 0x15e   : > { %v4308_v40 = vld [vmem:[%s5086_s6 + $0x420] ss:$24 sps:$4 sm:$0xff]  }
 0x160   : > { %1653 = vmatpush1.bf16.msra.mxu0 %v4215_v41  ;;  %1776 = vmatpush1.bf16.msra.mxu1 %v4218_v42  ;;  %v4313_v41 = vld [vmem:[%s5086_s6 + $0x154] ss:$24 sps:$4 sm:$0xff]  }
 0x161   : > { %1654 = vmatprep.subr.bf16.mxu0 %v4223_v43  ;;  %1777 = vmatprep.subr.bf16.mxu1 %v4226_v44  ;;  %v4316_v42 = vld [vmem:[%s5086_s6 + $0x454] ss:$24 sps:$4 sm:$0xff]   ;;  %v4311_v43 = vld [vmem:[%s5086_s6 + $0x150] ss:$24 sps:$4 sm:$0xff]  }
 0x162   : > { %v4314_v44 = vld [vmem:[%s5086_s6 + $0x450] ss:$24 sps:$4 sm:$0xff]  }
 0x164   : > { %1655 = vmatpush1.bf16.msra.mxu0 %v4221_v45  ;;  %1778 = vmatpush1.bf16.msra.mxu1 %v4224_v46  ;;  %v4319_v45 = vld [vmem:[%s5086_s6 + $0x184] ss:$24 sps:$4 sm:$0xff]  }
 0x165   : > { %1656 = vmatprep.subr.bf16.mxu0 %v4229_v47  ;;  %1779 = vmatprep.subr.bf16.mxu1 %v4232_v48  ;;  %v4322_v46 = vld [vmem:[%s5086_s6 + $0x484] ss:$24 sps:$4 sm:$0xff]   ;;  %v4317_v47 = vld [vmem:[%s5086_s6 + $0x180] ss:$24 sps:$4 sm:$0xff]  }
 0x166   : > { %v4320_v48 = vld [vmem:[%s5086_s6 + $0x480] ss:$24 sps:$4 sm:$0xff]  }
 0x168   : > { %1657 = vmatpush1.bf16.msra.mxu0 %v4227_v49  ;;  %1780 = vmatpush1.bf16.msra.mxu1 %v4230_v50  ;;  %v4325_v49 = vld [vmem:[%s5086_s6 + $0x1b4] ss:$24 sps:$4 sm:$0xff]  }
 0x169   : > { %1658 = vmatprep.subr.bf16.mxu0 %v4235_v51  ;;  %1781 = vmatprep.subr.bf16.mxu1 %v4238_v52  ;;  %v4328_v50 = vld [vmem:[%s5086_s6 + $0x4b4] ss:$24 sps:$4 sm:$0xff]   ;;  %v4323_v51 = vld [vmem:[%s5086_s6 + $0x1b0] ss:$24 sps:$4 sm:$0xff]  }
 0x16a   : > { %v4326_v52 = vld [vmem:[%s5086_s6 + $0x4b0] ss:$24 sps:$4 sm:$0xff]  }
 0x16c   : > { %1659 = vmatpush1.bf16.msra.mxu0 %v4233_v53  ;;  %1782 = vmatpush1.bf16.msra.mxu1 %v4236_v54  ;;  %v4331_v53 = vld [vmem:[%s5086_s6 + $0x1e4] ss:$24 sps:$4 sm:$0xff]  }
 0x16d   : > { %1660 = vmatprep.subr.bf16.mxu0 %v4241_v55  ;;  %1783 = vmatprep.subr.bf16.mxu1 %v4244_v56  ;;  %v4334_v54 = vld [vmem:[%s5086_s6 + $0x4e4] ss:$24 sps:$4 sm:$0xff]   ;;  %v4329_v55 = vld [vmem:[%s5086_s6 + $0x1e0] ss:$24 sps:$4 sm:$0xff]  }
 0x16e   : > { %v4332_v56 = vld [vmem:[%s5086_s6 + $0x4e0] ss:$24 sps:$4 sm:$0xff]  }
 0x170   : > { %1661 = vmatpush1.bf16.msra.mxu0 %v4239_v57  ;;  %1784 = vmatpush1.bf16.msra.mxu1 %v4242_v58  ;;  %v4335_v57 = vld [vmem:[%s5086_s6 + $0x210] ss:$24 sps:$4 sm:$0xff]   ;;  %v4337_v58 = vld [vmem:[%s5086_s6 + $0x214] ss:$24 sps:$4 sm:$0xff]  }
 0x171   : > { %1662 = vmatprep.subr.bf16.mxu0 %v4247_v59  ;;  %1785 = vmatprep.subr.bf16.mxu1 %v4250_v60  ;;  %v4338_v59 = vld [vmem:[%s5086_s6 + $0x510] ss:$24 sps:$4 sm:$0xff]   ;;  %v4340_v60 = vld [vmem:[%s5086_s6 + $0x514] ss:$24 sps:$4 sm:$0xff]  }
 0x174   : > { %1663 = vmatpush1.bf16.msra.mxu0 %v4245_v61  ;;  %1786 = vmatpush1.bf16.msra.mxu1 %v4248_v62  ;;  %v4343_v61 = vld [vmem:[%s5086_s6 + $0x244] ss:$24 sps:$4 sm:$0xff]  }
 0x175   : > { %1664 = vmatprep.subr.bf16.mxu0 %v4253_v63  ;;  %1787 = vmatprep.subr.bf16.mxu1 %v4256_v0  ;;  %v4346_v62 = vld [vmem:[%s5086_s6 + $0x544] ss:$24 sps:$4 sm:$0xff]   ;;  %v4341_v63 = vld [vmem:[%s5086_s6 + $0x240] ss:$24 sps:$4 sm:$0xff]  }
 0x176   : > { %v4344_v0 = vld [vmem:[%s5086_s6 + $0x540] ss:$24 sps:$4 sm:$0xff]  }
 0x178   : > { %1665 = vmatpush1.bf16.msra.mxu0 %v4251_v1  ;;  %1788 = vmatpush1.bf16.msra.mxu1 %v4254_v2  ;;  %v4349_v1 = vld [vmem:[%s5086_s6 + $0x274] ss:$24 sps:$4 sm:$0xff]  }
 0x179   : > { %1666 = vmatprep.subr.bf16.mxu0 %v4259_v3  ;;  %1789 = vmatprep.subr.bf16.mxu1 %v4262_v4  ;;  %v4352_v2 = vld [vmem:[%s5086_s6 + $0x574] ss:$24 sps:$4 sm:$0xff]   ;;  %v4347_v3 = vld [vmem:[%s5086_s6 + $0x270] ss:$24 sps:$4 sm:$0xff]  }
 0x17a   : > { %v4350_v4 = vld [vmem:[%s5086_s6 + $0x570] ss:$24 sps:$4 sm:$0xff]  }
 0x17c   : > { %1667 = vmatpush1.bf16.msra.mxu0 %v4257_v5  ;;  %1790 = vmatpush1.bf16.msra.mxu1 %v4260_v6  ;;  %v4355_v5 = vld [vmem:[%s5086_s6 + $0x2a4] ss:$24 sps:$4 sm:$0xff]  }
 0x17d   : > { %1668 = vmatprep.subr.bf16.mxu0 %v4265_v7  ;;  %1791 = vmatprep.subr.bf16.mxu1 %v4268_v8  ;;  %v4358_v6 = vld [vmem:[%s5086_s6 + $0x5a4] ss:$24 sps:$4 sm:$0xff]   ;;  %v4353_v7 = vld [vmem:[%s5086_s6 + $0x2a0] ss:$24 sps:$4 sm:$0xff]  }
 0x17e   : > { %v4356_v8 = vld [vmem:[%s5086_s6 + $0x5a0] ss:$24 sps:$4 sm:$0xff]  }
 0x180   : > { %1669 = vmatpush1.bf16.msra.mxu0 %v4263_v9  ;;  %1792 = vmatpush1.bf16.msra.mxu1 %v4266_v10  ;;  %v4361_v9 = vld [vmem:[%s5086_s6 + $0x2d4] ss:$24 sps:$4 sm:$0xff]  }
 0x181   : > { %3000 = vmatprep.subr.bf16.mxu0 %v4271_v12  ;;  %3041 = vmatprep.subr.bf16.mxu1 %v4274_v13  ;;  %v4364_v10 = vld [vmem:[%s5086_s6 + $0x5d4] ss:$24 sps:$4 sm:$0xff]   ;;  %v4362_v12 = vld [vmem:[%s5086_s6 + $0x5d0] ss:$24 sps:$4 sm:$0xff]  }
 0x182   : > { %v4367_v13 = vld [vmem:[%s5086_s6 + $0xc] ss:$24 sps:$4 sm:$0xff]  }
 0x183   : > { %1671 = vmatmul.mubr.bf16.vlgmr.msra.gmra.mrb[0].mxu0 %v380_v16  ;;  %1794 = vmatmul.mubr.bf16.vlgmr.msra.gmra.mrb[0].mxu1 %v380_v16 }
 0x184   : > { %3001 = vmatpush1.bf16.msra.mxu0 %v4269_v14  ;;  %3042 = vmatpush1.bf16.msra.mxu1 %v4272_v15  ;;  %v4370_v14 = vld [vmem:[%s5086_s6 + $0x30c] ss:$24 sps:$4 sm:$0xff]   ;;  %v576_v15 = vlaneseq }
 0x185   : > { %3002 = vmatprep.subr.bf16.mxu0 %v4277_v17  ;;  %3043 = vmatprep.subr.bf16.mxu1 %v4280_v18 }
 0x186   : > { %v5355_v16 = vshrl.u32 %v576_v15, 7 }
 0x188   : > { %3003 = vmatpush1.bf16.msra.mxu0 %v4275_v19  ;;  %3044 = vmatpush1.bf16.msra.mxu1 %v4278_v20  ;;  %v578_v17 = vsub.s32 0, %v5355_v16  ;;  %v586_v18 = vsub.s32 2, %v5355_v16  ;;  %v574_v19 = vld [vmem:[%s312_s7] sm:$0xf]  ;;  %v582_v20 = vsub.s32 1, %v5355_v16 }
 0x189   : > { %3004 = vmatprep.subr.bf16.mxu0 %v4283_v21  ;;  %3045 = vmatprep.subr.bf16.mxu1 %v4286_v22  ;;  %v590_v21 = vsub.s32 3, %v5355_v16 }
 0x18a   : > { %v579_v22 = vrot.slane %v574_v19, %v578_v17 }
 0x18c   : > { %3005 = vmatpush1.bf16.msra.mxu0 %v4281_v23  ;;  %3046 = vmatpush1.bf16.msra.mxu1 %v4284_v24  ;;  %v587_v23 = vrot.slane %v574_v19, %v586_v18  ;;  %v583_v24 = vrot.slane %v574_v19, %v582_v20 }
 0x18d   : > { %3006 = vmatprep.subr.bf16.mxu0 %v4289_v25  ;;  %3047 = vmatprep.subr.bf16.mxu1 %v4292_v26  ;;  %v591_v25 = vrot.slane %v574_v19, %v590_v21  ;;  %v4373_v19 = vld [vmem:[%s5086_s6 + $0x3c] ss:$24 sps:$4 sm:$0xff]  }
 0x190   : > { %3007 = vmatpush1.bf16.msra.mxu0 %v4287_v27  ;;  %3048 = vmatpush1.bf16.msra.mxu1 %v4290_v28 }
 0x191   : > { %3008 = vmatprep.subr.bf16.mxu0 %v4295_v29  ;;  %3049 = vmatprep.subr.bf16.mxu1 %v4298_v30 }
 0x194   : > { %3009 = vmatpush1.bf16.msra.mxu0 %v4293_v31  ;;  %3050 = vmatpush1.bf16.msra.mxu1 %v4296_v32 }
 0x195   : > { %3010 = vmatprep.subr.bf16.mxu0 %v4301_v33  ;;  %3051 = vmatprep.subr.bf16.mxu1 %v4304_v34 }
 0x198   : > { %3011 = vmatpush1.bf16.msra.mxu0 %v4299_v35  ;;  %3052 = vmatpush1.bf16.msra.mxu1 %v4302_v36 }
 0x199   : > { %3012 = vmatprep.subr.bf16.mxu0 %v4307_v37  ;;  %3053 = vmatprep.subr.bf16.mxu1 %v4310_v38 }
 0x19c   : > { %3013 = vmatpush1.bf16.msra.mxu0 %v4305_v39  ;;  %3054 = vmatpush1.bf16.msra.mxu1 %v4308_v40 }
 0x19d   : > { %3014 = vmatprep.subr.bf16.mxu0 %v4313_v41  ;;  %3055 = vmatprep.subr.bf16.mxu1 %v4316_v42 }
 0x1a0   : > { %3015 = vmatpush1.bf16.msra.mxu0 %v4311_v43  ;;  %3056 = vmatpush1.bf16.msra.mxu1 %v4314_v44 }
 0x1a1   : > { %3016 = vmatprep.subr.bf16.mxu0 %v4319_v45  ;;  %3057 = vmatprep.subr.bf16.mxu1 %v4322_v46 }
 0x1a4   : > { %3017 = vmatpush1.bf16.msra.mxu0 %v4317_v47  ;;  %3058 = vmatpush1.bf16.msra.mxu1 %v4320_v48 }
 0x1a5   : > { %3018 = vmatprep.subr.bf16.mxu0 %v4325_v49  ;;  %3059 = vmatprep.subr.bf16.mxu1 %v4328_v50 }
 0x1a8   : > { %3019 = vmatpush1.bf16.msra.mxu0 %v4323_v51  ;;  %3060 = vmatpush1.bf16.msra.mxu1 %v4326_v52 }
 0x1a9   : > { %3020 = vmatprep.subr.bf16.mxu0 %v4331_v53  ;;  %3061 = vmatprep.subr.bf16.mxu1 %v4334_v54 }
 0x1ac   : > { %3021 = vmatpush1.bf16.msra.mxu0 %v4329_v55  ;;  %3062 = vmatpush1.bf16.msra.mxu1 %v4332_v56 }
 0x1ad   : > { %3022 = vmatprep.subr.bf16.mxu0 %v4337_v58  ;;  %3063 = vmatprep.subr.bf16.mxu1 %v4340_v60 }
 0x1b0   : > { %3023 = vmatpush1.bf16.msra.mxu0 %v4335_v57  ;;  %3064 = vmatpush1.bf16.msra.mxu1 %v4338_v59 }
 0x1b1   : > { %3024 = vmatprep.subr.bf16.mxu0 %v4343_v61  ;;  %3065 = vmatprep.subr.bf16.mxu1 %v4346_v62 }
 0x1b4   : > { %3025 = vmatpush1.bf16.msra.mxu0 %v4341_v63  ;;  %3066 = vmatpush1.bf16.msra.mxu1 %v4344_v0 }
 0x1b5   : > { %3026 = vmatprep.subr.bf16.mxu0 %v4349_v1  ;;  %3067 = vmatprep.subr.bf16.mxu1 %v4352_v2 }
 0x1b8   : > { %3027 = vmatpush1.bf16.msra.mxu0 %v4347_v3  ;;  %3068 = vmatpush1.bf16.msra.mxu1 %v4350_v4 }
 0x1b9   : > { %3028 = vmatprep.subr.bf16.mxu0 %v4355_v5  ;;  %3069 = vmatprep.subr.bf16.mxu1 %v4358_v6 }
 0x1bc   : > { %3029 = vmatpush1.bf16.msra.mxu0 %v4353_v7  ;;  %3070 = vmatpush1.bf16.msra.mxu1 %v4356_v8 }
 0x1bd   : > { %3030 = vmatprep.subr.bf16.mxu0 %v4361_v9  ;;  %3071 = vmatprep.subr.bf16.mxu1 %v4364_v10  ;;  %v4365_v10 = vld [vmem:[%s5086_s6 + $0x8] ss:$24 sps:$4 sm:$0xff]  }
 0x1c0   : > { %3031 = vmatpush1.bf16.msra.mxu0 %v4359_v11  ;;  %3072 = vmatpush1.bf16.msra.mxu1 %v4362_v12 }
 0x1c1   : > { %3082 = vmatprep.subr.bf16.mxu0 %v4367_v13  ;;  %3123 = vmatprep.subr.bf16.mxu1 %v4370_v14  ;;  %v4368_v13 = vld [vmem:[%s5086_s6 + $0x308] ss:$24 sps:$4 sm:$0xff]  }
 0x256   : > { %v1672_v26 = vpop.f32.mrb[0].mxu0  ;;  %v1795_v27 = vpop.f32.mrb[0].mxu1 }
 0x257   : > { %v3858_v28 = vadd.f32 %v1672_v26, %v579_v22  ;;  %v3860_v29 = vadd.f32 %v1795_v27, %v587_v23  ;;  %v1674_v30 = vpop.f32.mrb[1].mxu0  ;;  %v1797_v31 = vpop.f32.mrb[1].mxu1  ;;  %v4376_v22 = vld [vmem:[%s5086_s6 + $0x33c] ss:$24 sps:$4 sm:$0xff]   ;;  %v4371_v23 = vld [vmem:[%s5086_s6 + $0x38] ss:$24 sps:$4 sm:$0xff]  }
 0x258   : > { %v3859_v32 = vadd.f32 %v1674_v30, %v583_v24  ;;  %v3861_v33 = vadd.f32 %v1797_v31, %v591_v25  ;;  %v1676_v34 = vpop.f32.mrb[2].mxu0  ;;  %v1799_v35 = vpop.f32.mrb[2].mxu1  ;;  %v4374_v24 = vld [vmem:[%s5086_s6 + $0x338] ss:$24 sps:$4 sm:$0xff]   ;;  %v4379_v25 = vld [vmem:[%s5086_s6 + $0x6c] ss:$24 sps:$4 sm:$0xff]  }
 0x259   : > { %v1806_v36 = vmul.f32 0.044715, %v3858_v28  ;;  %v1808_v37 = vmul.f32 0.044715, %v3860_v29  ;;  %v1677_v38 = vpop.f32.mrb[3].mxu0  ;;  %v1800_v39 = vpop.f32.mrb[3].mxu1 }
 0x25a   : > { %v1807_v40 = vmul.f32 0.044715, %v3859_v32  ;;  %v1809_v41 = vmul.f32 0.044715, %v3861_v33  ;;  %v1802_v60 = vmul.f32 0.5, %v3858_v28  ;;  %v1803_v63 = vmul.f32 0.5, %v3859_v32 }
 0x25b   : > { %v1810_v42 = vmul.f32 %v3858_v28, %v1806_v36  ;;  %v1812_v43 = vmul.f32 %v3860_v29, %v1808_v37  ;;  %v1805_v2 = vmul.f32 0.5, %v3861_v33  ;;  %v1804_v6 = vmul.f32 0.5, %v3860_v29  ;;  %v4382_v26 = vld [vmem:[%s5086_s6 + $0x36c] ss:$24 sps:$4 sm:$0xff]   ;;  %v4377_v27 = vld [vmem:[%s5086_s6 + $0x68] ss:$24 sps:$4 sm:$0xff]  }
 0x25c   : > { %v1811_v44 = vmul.f32 %v3859_v32, %v1807_v40  ;;  %v1813_v45 = vmul.f32 %v3861_v33, %v1809_v41  ;;  %v4388_v30 = vld [vmem:[%s5086_s6 + $0x39c] ss:$24 sps:$4 sm:$0xff]   ;;  %v4383_v31 = vld [vmem:[%s5086_s6 + $0x98] ss:$24 sps:$4 sm:$0xff]   ;;  %v4394_v34 = vld [vmem:[%s5086_s6 + $0x3cc] ss:$24 sps:$4 sm:$0xff]  }
 0x25d   : > { %v1814_v46 = vmul.f32 %v3858_v28, %v1810_v42  ;;  %v1816_v47 = vmul.f32 %v3860_v29, %v1812_v43  ;;  %v4389_v35 = vld [vmem:[%s5086_s6 + $0xc8] ss:$24 sps:$4 sm:$0xff]   ;;  %v4397_v37 = vld [vmem:[%s5086_s6 + $0xfc] ss:$24 sps:$4 sm:$0xff]   ;;  %v4395_v39 = vld [vmem:[%s5086_s6 + $0xf8] ss:$24 sps:$4 sm:$0xff]  }
 0x25e   : > { %v1815_v48 = vmul.f32 %v3859_v32, %v1811_v44  ;;  %v1817_v49 = vmul.f32 %v3861_v33, %v1813_v45  ;;  %v4392_v36 = vld [vmem:[%s5086_s6 + $0x3c8] ss:$24 sps:$4 sm:$0xff]   ;;  %v4400_v38 = vld [vmem:[%s5086_s6 + $0x3fc] ss:$24 sps:$4 sm:$0xff]   ;;  %v4398_v40 = vld [vmem:[%s5086_s6 + $0x3f8] ss:$24 sps:$4 sm:$0xff]  }
 0x25f   : > { %v1818_v50 = vadd.f32 %v3858_v28, %v1814_v46  ;;  %v1820_v51 = vadd.f32 %v3860_v29, %v1816_v47  ;;  %v4380_v28 = vld [vmem:[%s5086_s6 + $0x368] ss:$24 sps:$4 sm:$0xff]   ;;  %v4385_v29 = vld [vmem:[%s5086_s6 + $0x9c] ss:$24 sps:$4 sm:$0xff]   ;;  %v4403_v41 = vld [vmem:[%s5086_s6 + $0x12c] ss:$24 sps:$4 sm:$0xff]  }
 0x260   : > { %v1819_v52 = vadd.f32 %v3859_v32, %v1815_v48  ;;  %v1821_v53 = vadd.f32 %v3861_v33, %v1817_v49  ;;  %v4386_v32 = vld [vmem:[%s5086_s6 + $0x398] ss:$24 sps:$4 sm:$0xff]   ;;  %v4391_v33 = vld [vmem:[%s5086_s6 + $0xcc] ss:$24 sps:$4 sm:$0xff]   ;;  %v4401_v43 = vld [vmem:[%s5086_s6 + $0x128] ss:$24 sps:$4 sm:$0xff]  }
 0x261   : > { %v1822_v54 = vmul.f32 0.7978845, %v1818_v50  ;;  %v1824_v57 = vmul.f32 0.7978845, %v1820_v51  ;;  %v4406_v42 = vld [vmem:[%s5086_s6 + $0x42c] ss:$24 sps:$4 sm:$0xff]  }
 0x262   : > { %v1823_v55 = vmul.f32 0.7978845, %v1819_v52  ;;  %v1825_v56 = vmul.f32 0.7978845, %v1821_v53  ;;  %v4404_v44 = vld [vmem:[%s5086_s6 + $0x428] ss:$24 sps:$4 sm:$0xff]  }
 0x263   : > { %4557 = vtanh.f32 %v1822_v54  ;;  %v4409_v45 = vld [vmem:[%s5086_s6 + $0x15c] ss:$24 sps:$4 sm:$0xff]   ;;  %v4407_v47 = vld [vmem:[%s5086_s6 + $0x158] ss:$24 sps:$4 sm:$0xff]   ;;  %v4415_v49 = vld [vmem:[%s5086_s6 + $0x18c] ss:$24 sps:$4 sm:$0xff]  }
 0x264   : > { %4559 = vtanh.f32 %v1823_v55  ;;  %v4412_v46 = vld [vmem:[%s5086_s6 + $0x45c] ss:$24 sps:$4 sm:$0xff]   ;;  %v4410_v48 = vld [vmem:[%s5086_s6 + $0x458] ss:$24 sps:$4 sm:$0xff]   ;;  %v4418_v50 = vld [vmem:[%s5086_s6 + $0x48c] ss:$24 sps:$4 sm:$0xff]  }
 0x265   : > { %4561 = vtanh.f32 %v1825_v56  ;;  %v4413_v51 = vld [vmem:[%s5086_s6 + $0x188] ss:$24 sps:$4 sm:$0xff]   ;;  %v4421_v53 = vld [vmem:[%s5086_s6 + $0x1bc] ss:$24 sps:$4 sm:$0xff]   ;;  %v4419_v55 = vld [vmem:[%s5086_s6 + $0x1b8] ss:$24 sps:$4 sm:$0xff]  }
 0x266   : > { %4563 = vtanh.f32 %v1824_v57  ;;  %v4416_v52 = vld [vmem:[%s5086_s6 + $0x488] ss:$24 sps:$4 sm:$0xff]   ;;  %v4424_v54 = vld [vmem:[%s5086_s6 + $0x4bc] ss:$24 sps:$4 sm:$0xff]   ;;  %v4422_v56 = vld [vmem:[%s5086_s6 + $0x4b8] ss:$24 sps:$4 sm:$0xff]  }
 0x267   : > { %v4427_v57 = vld [vmem:[%s5086_s6 + $0x1ec] ss:$24 sps:$4 sm:$0xff]  }
 0x26d   : > { %v4558_v58 = vpop.eup %4557 }
 0x26e   : > { %v4560_v59 = vpop.eup %4559  ;;  %v1830_v61 = vadd.f32 1.0, %v4558_v58  ;;  %v4430_v58 = vld [vmem:[%s5086_s6 + $0x4ec] ss:$24 sps:$4 sm:$0xff]  }
 0x26f   : > { %v4562_v62 = vpop.eup %4561  ;;  %v1831_v0 = vadd.f32 1.0, %v4560_v59  ;;  %v4425_v59 = vld [vmem:[%s5086_s6 + $0x1e8] ss:$24 sps:$4 sm:$0xff]  }
 0x270   : > { %v4564_v1 = vpop.eup %4563  ;;  %v1833_v3 = vadd.f32 1.0, %v4562_v62  ;;  %v1834_v4 = vmul.f32 %v1830_v61, %v1802_v60  ;;  %v4428_v60 = vld [vmem:[%s5086_s6 + $0x4e8] ss:$24 sps:$4 sm:$0xff]   ;;  %v4433_v61 = vld [vmem:[%s5086_s6 + $0x21c] ss:$24 sps:$4 sm:$0xff]  }
 0x271   : > { %v1835_v5 = vmul.f32 %v1831_v0, %v1803_v63  ;;  %v1832_v7 = vadd.f32 1.0, %v4564_v1  ;;  %v4436_v62 = vld [vmem:[%s5086_s6 + $0x51c] ss:$24 sps:$4 sm:$0xff]   ;;  %v4431_v63 = vld [vmem:[%s5086_s6 + $0x218] ss:$24 sps:$4 sm:$0xff]  }
 0x272   : > { %v1837_v8 = vmul.f32 %v1833_v3, %v1805_v2  ;;  %v5377_v14 = vpack.c.bf16 %v1834_v4, %v1834_v4  ;;  %v4434_v0 = vld [vmem:[%s5086_s6 + $0x518] ss:$24 sps:$4 sm:$0xff]   ;;  %v4439_v1 = vld [vmem:[%s5086_s6 + $0x24c] ss:$24 sps:$4 sm:$0xff]   ;;  %v4437_v3 = vld [vmem:[%s5086_s6 + $0x248] ss:$24 sps:$4 sm:$0xff]  }
 0x273   : > { %v5371_v9 = vpack.c.bf16 %v1835_v5, %v1835_v5  ;;  %v1836_v11 = vmul.f32 %v1832_v7, %v1804_v6  ;;  %v4442_v2 = vld [vmem:[%s5086_s6 + $0x54c] ss:$24 sps:$4 sm:$0xff]   ;;  %v4440_v4 = vld [vmem:[%s5086_s6 + $0x548] ss:$24 sps:$4 sm:$0xff]   ;;  %v4445_v5 = vld [vmem:[%s5086_s6 + $0x27c] ss:$24 sps:$4 sm:$0xff]  }
 0x274   : > { %v5374_v12 = vpack.c.bf16 %v1837_v8, %v1837_v8  ;;  %v4448_v6 = vld [vmem:[%s5086_s6 + $0x57c] ss:$24 sps:$4 sm:$0xff]   ;;  %v4443_v7 = vld [vmem:[%s5086_s6 + $0x278] ss:$24 sps:$4 sm:$0xff]  }
 0x275   : > { %3032 = vmatprep.mubr.bf16.mxu0 %v5371_v9  ;;  %v5380_v15 = vpack.c.bf16 %v1836_v11, %v1836_v11  ;;  %v4446_v8 = vld [vmem:[%s5086_s6 + $0x578] ss:$24 sps:$4 sm:$0xff]   ;;  %v4454_v11 = vld [vmem:[%s5086_s6 + $0x5ac] ss:$24 sps:$4 sm:$0xff]  }
 0x276   : > { %3073 = vmatprep.mubr.bf16.mxu1 %v5374_v12  ;;  %3033 = vmatmul.mubr.bf16.vlgmr.msra.gmra.mrb[4].mxu0 %v5377_v14 }
 0x277   : > { %3074 = vmatmul.mubr.bf16.vlgmr.msra.gmra.mrb[4].mxu1 %v5380_v15  ;;  %3083 = vmatpush1.bf16.msra.mxu0 %v4365_v10  ;;  %v4451_v10 = vld [vmem:[%s5086_s6 + $0x2ac] ss:$24 sps:$4 sm:$0xff]  }
 0x278   : > { %3124 = vmatpush1.bf16.msra.mxu1 %v4368_v13  ;;  %3114 = vmatprep.mubr.bf16.mxu0 %v5371_v9  ;;  %v4449_v13 = vld [vmem:[%s5086_s6 + $0x2a8] ss:$24 sps:$4 sm:$0xff]  }
 0x279   : > { %3155 = vmatprep.mubr.bf16.mxu1 %v5374_v12  ;;  %3084 = vmatprep.subr.bf16.mxu0 %v4373_v19  ;;  %v4452_v19 = vld [vmem:[%s5086_s6 + $0x5a8] ss:$24 sps:$4 sm:$0xff]  }
 0x27a   : > { %3125 = vmatprep.subr.bf16.mxu1 %v4376_v22  ;;  %v4457_v22 = vld [vmem:[%s5086_s6 + $0x2dc] ss:$24 sps:$4 sm:$0xff]  }
 0x27b   : > { %3085 = vmatpush1.bf16.msra.mxu0 %v4371_v23  ;;  %v4460_v23 = vld [vmem:[%s5086_s6 + $0x5dc] ss:$24 sps:$4 sm:$0xff]  }
 0x27c   : > { %3126 = vmatpush1.bf16.msra.mxu1 %v4374_v24  ;;  %3086 = vmatprep.subr.bf16.mxu0 %v4379_v25  ;;  %v4455_v24 = vld [vmem:[%s5086_s6 + $0x2d8] ss:$24 sps:$4 sm:$0xff]  }
 0x27d   : > { %3127 = vmatprep.subr.bf16.mxu1 %v4382_v26  ;;  %v4458_v25 = vld [vmem:[%s5086_s6 + $0x5d8] ss:$24 sps:$4 sm:$0xff]   ;;  %v4463_v26 = vld [vmem:[%s5086_s6 + $0x14] ss:$24 sps:$4 sm:$0xff]  }
 0x27f   : > { %3087 = vmatpush1.bf16.msra.mxu0 %v4377_v27  ;;  %v4466_v27 = vld [vmem:[%s5086_s6 + $0x314] ss:$24 sps:$4 sm:$0xff]  }
 0x280   : > { %3128 = vmatpush1.bf16.msra.mxu1 %v4380_v28  ;;  %3088 = vmatprep.subr.bf16.mxu0 %v4385_v29  ;;  %v4461_v28 = vld [vmem:[%s5086_s6 + $0x10] ss:$24 sps:$4 sm:$0xff]  }
 0x281   : > { %3129 = vmatprep.subr.bf16.mxu1 %v4388_v30  ;;  %v4464_v29 = vld [vmem:[%s5086_s6 + $0x310] ss:$24 sps:$4 sm:$0xff]   ;;  %v4469_v30 = vld [vmem:[%s5086_s6 + $0x44] ss:$24 sps:$4 sm:$0xff]  }
 0x283   : > { %3089 = vmatpush1.bf16.msra.mxu0 %v4383_v31  ;;  %v4472_v31 = vld [vmem:[%s5086_s6 + $0x344] ss:$24 sps:$4 sm:$0xff]  }
 0x284   : > { %3130 = vmatpush1.bf16.msra.mxu1 %v4386_v32  ;;  %3090 = vmatprep.subr.bf16.mxu0 %v4391_v33  ;;  %v4467_v32 = vld [vmem:[%s5086_s6 + $0x40] ss:$24 sps:$4 sm:$0xff]  }
 0x285   : > { %3131 = vmatprep.subr.bf16.mxu1 %v4394_v34  ;;  %v4470_v33 = vld [vmem:[%s5086_s6 + $0x340] ss:$24 sps:$4 sm:$0xff]   ;;  %v4475_v34 = vld [vmem:[%s5086_s6 + $0x74] ss:$24 sps:$4 sm:$0xff]  }
 0x287   : > { %3091 = vmatpush1.bf16.msra.mxu0 %v4389_v35  ;;  %v4478_v35 = vld [vmem:[%s5086_s6 + $0x374] ss:$24 sps:$4 sm:$0xff]  }
 0x288   : > { %3132 = vmatpush1.bf16.msra.mxu1 %v4392_v36  ;;  %3092 = vmatprep.subr.bf16.mxu0 %v4397_v37  ;;  %v4473_v36 = vld [vmem:[%s5086_s6 + $0x70] ss:$24 sps:$4 sm:$0xff]  }
 0x289   : > { %3133 = vmatprep.subr.bf16.mxu1 %v4400_v38  ;;  %v4476_v37 = vld [vmem:[%s5086_s6 + $0x370] ss:$24 sps:$4 sm:$0xff]   ;;  %v4484_v38 = vld [vmem:[%s5086_s6 + $0x3a4] ss:$24 sps:$4 sm:$0xff]  }
 0x28b   : > { %3093 = vmatpush1.bf16.msra.mxu0 %v4395_v39  ;;  %v4482_v39 = vld [vmem:[%s5086_s6 + $0x3a0] ss:$24 sps:$4 sm:$0xff]  }
 0x28c   : > { %3134 = vmatpush1.bf16.msra.mxu1 %v4398_v40  ;;  %3094 = vmatprep.subr.bf16.mxu0 %v4403_v41  ;;  %v4487_v40 = vld [vmem:[%s5086_s6 + $0xd4] ss:$24 sps:$4 sm:$0xff]  }
 0x28d   : > { %3135 = vmatprep.subr.bf16.mxu1 %v4406_v42  ;;  %v4490_v41 = vld [vmem:[%s5086_s6 + $0x3d4] ss:$24 sps:$4 sm:$0xff]   ;;  %v4485_v42 = vld [vmem:[%s5086_s6 + $0xd0] ss:$24 sps:$4 sm:$0xff]  }
 0x28f   : > { %3095 = vmatpush1.bf16.msra.mxu0 %v4401_v43  ;;  %v4488_v43 = vld [vmem:[%s5086_s6 + $0x3d0] ss:$24 sps:$4 sm:$0xff]  }
 0x290   : > { %3136 = vmatpush1.bf16.msra.mxu1 %v4404_v44  ;;  %3096 = vmatprep.subr.bf16.mxu0 %v4409_v45  ;;  %v4493_v44 = vld [vmem:[%s5086_s6 + $0x104] ss:$24 sps:$4 sm:$0xff]  }
 0x291   : > { %3137 = vmatprep.subr.bf16.mxu1 %v4412_v46  ;;  %v4496_v45 = vld [vmem:[%s5086_s6 + $0x404] ss:$24 sps:$4 sm:$0xff]   ;;  %v4491_v46 = vld [vmem:[%s5086_s6 + $0x100] ss:$24 sps:$4 sm:$0xff]  }
 0x293   : > { %3097 = vmatpush1.bf16.msra.mxu0 %v4407_v47  ;;  %v4494_v47 = vld [vmem:[%s5086_s6 + $0x400] ss:$24 sps:$4 sm:$0xff]  }
 0x294   : > { %3138 = vmatpush1.bf16.msra.mxu1 %v4410_v48  ;;  %3098 = vmatprep.subr.bf16.mxu0 %v4415_v49  ;;  %v4499_v48 = vld [vmem:[%s5086_s6 + $0x134] ss:$24 sps:$4 sm:$0xff]  }
 0x295   : > { %3139 = vmatprep.subr.bf16.mxu1 %v4418_v50  ;;  %v4502_v49 = vld [vmem:[%s5086_s6 + $0x434] ss:$24 sps:$4 sm:$0xff]   ;;  %v4497_v50 = vld [vmem:[%s5086_s6 + $0x130] ss:$24 sps:$4 sm:$0xff]  }
 0x297   : > { %3099 = vmatpush1.bf16.msra.mxu0 %v4413_v51  ;;  %v4500_v51 = vld [vmem:[%s5086_s6 + $0x430] ss:$24 sps:$4 sm:$0xff]  }
 0x298   : > { %3140 = vmatpush1.bf16.msra.mxu1 %v4416_v52  ;;  %3100 = vmatprep.subr.bf16.mxu0 %v4421_v53  ;;  %v4505_v52 = vld [vmem:[%s5086_s6 + $0x164] ss:$24 sps:$4 sm:$0xff]  }
 0x299   : > { %3141 = vmatprep.subr.bf16.mxu1 %v4424_v54  ;;  %v4508_v53 = vld [vmem:[%s5086_s6 + $0x464] ss:$24 sps:$4 sm:$0xff]   ;;  %v4503_v54 = vld [vmem:[%s5086_s6 + $0x160] ss:$24 sps:$4 sm:$0xff]  }
 0x29b   : > { %3101 = vmatpush1.bf16.msra.mxu0 %v4419_v55  ;;  %v4506_v55 = vld [vmem:[%s5086_s6 + $0x460] ss:$24 sps:$4 sm:$0xff]  }
 0x29c   : > { %3142 = vmatpush1.bf16.msra.mxu1 %v4422_v56  ;;  %3102 = vmatprep.subr.bf16.mxu0 %v4427_v57  ;;  %v4511_v56 = vld [vmem:[%s5086_s6 + $0x194] ss:$24 sps:$4 sm:$0xff]  }
 0x29d   : > { %3143 = vmatprep.subr.bf16.mxu1 %v4430_v58  ;;  %v4514_v57 = vld [vmem:[%s5086_s6 + $0x494] ss:$24 sps:$4 sm:$0xff]   ;;  %v4509_v58 = vld [vmem:[%s5086_s6 + $0x190] ss:$24 sps:$4 sm:$0xff]  }
 0x29f   : > { %3103 = vmatpush1.bf16.msra.mxu0 %v4425_v59  ;;  %v4512_v59 = vld [vmem:[%s5086_s6 + $0x490] ss:$24 sps:$4 sm:$0xff]  }
 0x2a0   : > { %3144 = vmatpush1.bf16.msra.mxu1 %v4428_v60  ;;  %3104 = vmatprep.subr.bf16.mxu0 %v4433_v61  ;;  %v4517_v60 = vld [vmem:[%s5086_s6 + $0x1c4] ss:$24 sps:$4 sm:$0xff]  }
 0x2a1   : > { %3145 = vmatprep.subr.bf16.mxu1 %v4436_v62  ;;  %v4520_v61 = vld [vmem:[%s5086_s6 + $0x4c4] ss:$24 sps:$4 sm:$0xff]   ;;  %v4515_v62 = vld [vmem:[%s5086_s6 + $0x1c0] ss:$24 sps:$4 sm:$0xff]  }
 0x2a3   : > { %3105 = vmatpush1.bf16.msra.mxu0 %v4431_v63  ;;  %v4518_v63 = vld [vmem:[%s5086_s6 + $0x4c0] ss:$24 sps:$4 sm:$0xff]  }
 0x2a4   : > { %3146 = vmatpush1.bf16.msra.mxu1 %v4434_v0  ;;  %3106 = vmatprep.subr.bf16.mxu0 %v4439_v1  ;;  %v4523_v0 = vld [vmem:[%s5086_s6 + $0x1f4] ss:$24 sps:$4 sm:$0xff]  }
 0x2a5   : > { %3147 = vmatprep.subr.bf16.mxu1 %v4442_v2  ;;  %v4526_v1 = vld [vmem:[%s5086_s6 + $0x4f4] ss:$24 sps:$4 sm:$0xff]   ;;  %v4521_v2 = vld [vmem:[%s5086_s6 + $0x1f0] ss:$24 sps:$4 sm:$0xff]  }
 0x2a7   : > { %3107 = vmatpush1.bf16.msra.mxu0 %v4437_v3  ;;  %v4524_v3 = vld [vmem:[%s5086_s6 + $0x4f0] ss:$24 sps:$4 sm:$0xff]  }
 0x2a8   : > { %3148 = vmatpush1.bf16.msra.mxu1 %v4440_v4  ;;  %3108 = vmatprep.subr.bf16.mxu0 %v4445_v5  ;;  %v4529_v4 = vld [vmem:[%s5086_s6 + $0x224] ss:$24 sps:$4 sm:$0xff]  }
 0x2a9   : > { %3149 = vmatprep.subr.bf16.mxu1 %v4448_v6  ;;  %v4532_v5 = vld [vmem:[%s5086_s6 + $0x524] ss:$24 sps:$4 sm:$0xff]   ;;  %v4527_v6 = vld [vmem:[%s5086_s6 + $0x220] ss:$24 sps:$4 sm:$0xff]  }
 0x2ab   : > { %3109 = vmatpush1.bf16.msra.mxu0 %v4443_v7  ;;  %v4530_v7 = vld [vmem:[%s5086_s6 + $0x520] ss:$24 sps:$4 sm:$0xff]  }
 0x2ac   : > { %3150 = vmatpush1.bf16.msra.mxu1 %v4446_v8  ;;  %3110 = vmatprep.subr.bf16.mxu0 %v4451_v10  ;;  %v4535_v8 = vld [vmem:[%s5086_s6 + $0x254] ss:$24 sps:$4 sm:$0xff]  }
 0x2ad   : > { %3151 = vmatprep.subr.bf16.mxu1 %v4454_v11  ;;  %v4538_v10 = vld [vmem:[%s5086_s6 + $0x554] ss:$24 sps:$4 sm:$0xff]   ;;  %v4533_v11 = vld [vmem:[%s5086_s6 + $0x250] ss:$24 sps:$4 sm:$0xff]  }
 0x2af   : > { %3111 = vmatpush1.bf16.msra.mxu0 %v4449_v13  ;;  %v4536_v13 = vld [vmem:[%s5086_s6 + $0x550] ss:$24 sps:$4 sm:$0xff]  }
 0x2b0   : > { %3152 = vmatpush1.bf16.msra.mxu1 %v4452_v19  ;;  %3112 = vmatprep.subr.bf16.mxu0 %v4457_v22  ;;  %v4541_v19 = vld [vmem:[%s5086_s6 + $0x284] ss:$24 sps:$4 sm:$0xff]  }
 0x2b1   : > { %3153 = vmatprep.subr.bf16.mxu1 %v4460_v23  ;;  %v4544_v22 = vld [vmem:[%s5086_s6 + $0x584] ss:$24 sps:$4 sm:$0xff]   ;;  %v4539_v23 = vld [vmem:[%s5086_s6 + $0x280] ss:$24 sps:$4 sm:$0xff]  }
 0x2b3   : > { %3113 = vmatpush1.bf16.msra.mxu0 %v4455_v24  ;;  %v4542_v24 = vld [vmem:[%s5086_s6 + $0x580] ss:$24 sps:$4 sm:$0xff]  }
 0x2b4   : > { %3154 = vmatpush1.bf16.msra.mxu1 %v4458_v25  ;;  %3164 = vmatprep.subr.bf16.mxu0 %v4463_v26  ;;  %v4547_v25 = vld [vmem:[%s5086_s6 + $0x2b4] ss:$24 sps:$4 sm:$0xff]  }
 0x2b5   : > { %3205 = vmatprep.subr.bf16.mxu1 %v4466_v27  ;;  %v4550_v26 = vld [vmem:[%s5086_s6 + $0x5b4] ss:$24 sps:$4 sm:$0xff]   ;;  %v4545_v27 = vld [vmem:[%s5086_s6 + $0x2b0] ss:$24 sps:$4 sm:$0xff]  }
 0x2b6   : > { %3115 = vmatmul.mubr.bf16.vlgmr.msra.gmra.mrb[8].mxu0 %v5377_v14 }
 0x2b7   : > { %3156 = vmatmul.mubr.bf16.vlgmr.msra.gmra.mrb[8].mxu1 %v5380_v15  ;;  %3165 = vmatpush1.bf16.msra.mxu0 %v4461_v28  ;;  %v4548_v28 = vld [vmem:[%s5086_s6 + $0x5b0] ss:$24 sps:$4 sm:$0xff]  }
 0x2b8   : > { %3196 = vmatprep.mubr.bf16.mxu0 %v5371_v9  ;;  %3206 = vmatpush1.bf16.msra.mxu1 %v4464_v29  ;;  %v4481_v9 = vld [vmem:[%s5086_s6 + $0xa4] ss:$24 sps:$4 sm:$0xff]  }
 0x2b9   : > { %3237 = vmatprep.mubr.bf16.mxu1 %v5374_v12  ;;  %3166 = vmatprep.subr.bf16.mxu0 %v4469_v30  ;;  %v4479_v12 = vld [vmem:[%s5086_s6 + $0xa0] ss:$24 sps:$4 sm:$0xff]   ;;  %v4553_v29 = vld [vmem:[%s5086_s6 + $0x2e4] ss:$24 sps:$4 sm:$0xff]  }
 0x2ba   : > { %3207 = vmatprep.subr.bf16.mxu1 %v4472_v31  ;;  %v4556_v30 = vld [vmem:[%s5086_s6 + $0x5e4] ss:$24 sps:$4 sm:$0xff]   ;;  %v4551_v31 = vld [vmem:[%s5086_s6 + $0x2e0] ss:$24 sps:$4 sm:$0xff]  }
 0x2bb   : > { %3167 = vmatpush1.bf16.msra.mxu0 %v4467_v32  ;;  %v4554_v32 = vld [vmem:[%s5086_s6 + $0x5e0] ss:$24 sps:$4 sm:$0xff]  }
 0x2bc   : > { %3208 = vmatpush1.bf16.msra.mxu1 %v4470_v33  ;;  %3168 = vmatprep.subr.bf16.mxu0 %v4475_v34  ;;  %v1838_v34 = vld [vmem:[#allocation2] sm:$0xff] }
 0x2bd   : > { %3209 = vmatprep.subr.bf16.mxu1 %v4478_v35 }
 0x2bf   : > { %3169 = vmatpush1.bf16.msra.mxu0 %v4473_v36 }
 0x2c0   : > { %3210 = vmatpush1.bf16.msra.mxu1 %v4476_v37  ;;  %3170 = vmatprep.subr.bf16.mxu0 %v4481_v9  ;;  %v1839_v9 = vld [vmem:[#allocation2 + $0x8] sm:$0xff] }
 0x2c1   : > { %3211 = vmatprep.subr.bf16.mxu1 %v4484_v38 }
 0x2c3   : > { %3171 = vmatpush1.bf16.msra.mxu0 %v4479_v12 }
 0x2c4   : > { %3212 = vmatpush1.bf16.msra.mxu1 %v4482_v39  ;;  %3172 = vmatprep.subr.bf16.mxu0 %v4487_v40 }
 0x2c5   : > { %3213 = vmatprep.subr.bf16.mxu1 %v4490_v41 }
 0x2c7   : > { %3173 = vmatpush1.bf16.msra.mxu0 %v4485_v42 }
 0x2c8   : > { %3214 = vmatpush1.bf16.msra.mxu1 %v4488_v43  ;;  %3174 = vmatprep.subr.bf16.mxu0 %v4493_v44 }
 0x2c9   : > { %3215 = vmatprep.subr.bf16.mxu1 %v4496_v45 }
 0x2cb   : > { %3175 = vmatpush1.bf16.msra.mxu0 %v4491_v46 }
 0x2cc   : > { %3216 = vmatpush1.bf16.msra.mxu1 %v4494_v47  ;;  %3176 = vmatprep.subr.bf16.mxu0 %v4499_v48  ;;  %v1841_v48 = vld [vmem:[#allocation2 + $0x18] sm:$0xff] }
 0x2cd   : > { %3217 = vmatprep.subr.bf16.mxu1 %v4502_v49 }
 0x2cf   : > { %3177 = vmatpush1.bf16.msra.mxu0 %v4497_v50 }
 0x2d0   : > { %3218 = vmatpush1.bf16.msra.mxu1 %v4500_v51  ;;  %3178 = vmatprep.subr.bf16.mxu0 %v4505_v52 }
 0x2d1   : > { %3219 = vmatprep.subr.bf16.mxu1 %v4508_v53 }
 0x2d3   : > { %3179 = vmatpush1.bf16.msra.mxu0 %v4503_v54 }
 0x2d4   : > { %3220 = vmatpush1.bf16.msra.mxu1 %v4506_v55  ;;  %3180 = vmatprep.subr.bf16.mxu0 %v4511_v56 }
 0x2d5   : > { %3221 = vmatprep.subr.bf16.mxu1 %v4514_v57 }
 0x2d7   : > { %3181 = vmatpush1.bf16.msra.mxu0 %v4509_v58  ;;  %v1842_v58 = vld [vmem:[#allocation2 + $0x20] sm:$0xff] }
 0x2d8   : > { %3222 = vmatpush1.bf16.msra.mxu1 %v4512_v59  ;;  %3182 = vmatprep.subr.bf16.mxu0 %v4517_v60 }
 0x2d9   : > { %3223 = vmatprep.subr.bf16.mxu1 %v4520_v61 }
 0x2db   : > { %3183 = vmatpush1.bf16.msra.mxu0 %v4515_v62  ;;  %v1843_v62 = vld [vmem:[#allocation2 + $0x28] sm:$0xff] }
 0x2dc   : > { %3224 = vmatpush1.bf16.msra.mxu1 %v4518_v63  ;;  %3184 = vmatprep.subr.bf16.mxu0 %v4523_v0 }
 0x2dd   : > { %3225 = vmatprep.subr.bf16.mxu1 %v4526_v1 }
 0x2df   : > { %3185 = vmatpush1.bf16.msra.mxu0 %v4521_v2 }
 0x2e0   : > { %3226 = vmatpush1.bf16.msra.mxu1 %v4524_v3  ;;  %3186 = vmatprep.subr.bf16.mxu0 %v4529_v4 }
 0x2e1   : > { %3227 = vmatprep.subr.bf16.mxu1 %v4532_v5 }
 0x2e3   : > { %3187 = vmatpush1.bf16.msra.mxu0 %v4527_v6 }
 0x2e4   : > { %3228 = vmatpush1.bf16.msra.mxu1 %v4530_v7  ;;  %3188 = vmatprep.subr.bf16.mxu0 %v4535_v8  ;;  %v3268_v8 = vld [vmem:[#allocation11] sm:$0x3f] (!%p3851_p12) }
 0x2e5   : > { %3229 = vmatprep.subr.bf16.mxu1 %v4538_v10 }
 0x2e7   : > { %3189 = vmatpush1.bf16.msra.mxu0 %v4533_v11  ;;  %v3288_v11 = vsub.s32 (!%p3851_p12), 4, %v5355_v16 }
 0x2e8   : > { %3230 = vmatpush1.bf16.msra.mxu1 %v4536_v13  ;;  %3190 = vmatprep.subr.bf16.mxu0 %v4541_v19  ;;  %v3292_v13 = vsub.s32 (!%p3851_p12), 5, %v5355_v16  ;;  %v3273_v19 = vrot.slane (!%p3851_p12), %v3268_v8, %v578_v17 }
 0x2e9   : > { %3231 = vmatprep.subr.bf16.mxu1 %v4544_v22  ;;  %v3277_v22 = vrot.slane (!%p3851_p12), %v3268_v8, %v582_v20 }
 0x2eb   : > { %3191 = vmatpush1.bf16.msra.mxu0 %v4539_v23 }
 0x2ec   : > { %3232 = vmatpush1.bf16.msra.mxu1 %v4542_v24  ;;  %3192 = vmatprep.subr.bf16.mxu0 %v4547_v25  ;;  %v3281_v24 = vrot.slane (!%p3851_p12), %v3268_v8, %v586_v18 }
 0x2ed   : > { %3233 = vmatprep.subr.bf16.mxu1 %v4550_v26  ;;  %v3285_v26 = vrot.slane (!%p3851_p12), %v3268_v8, %v590_v21 }
 0x2ef   : > { %3193 = vmatpush1.bf16.msra.mxu0 %v4545_v27 }
 0x2f0   : > { %3234 = vmatpush1.bf16.msra.mxu1 %v4548_v28  ;;  %3194 = vmatprep.subr.bf16.mxu0 %v4553_v29  ;;  %v3289_v28 = vrot.slane (!%p3851_p12), %v3268_v8, %v3288_v11 }
 0x2f1   : > { %3235 = vmatprep.subr.bf16.mxu1 %v4556_v30  ;;  %v3293_v30 = vrot.slane (!%p3851_p12), %v3268_v8, %v3292_v13 }
 0x2f3   : > { %3195 = vmatpush1.bf16.msra.mxu0 %v4551_v31 }
 0x2f4   : > { %3236 = vmatpush1.bf16.msra.mxu1 %v4554_v32 }
 0x2f6   : > { %3197 = vmatmul.mubr.bf16.vlgmr.msra.gmra.mrb[12].mxu0 %v5377_v14  ;;  %v1840_v14 = vld [vmem:[#allocation2 + $0x10] sm:$0xff] }
 0x2f7   : > { %3238 = vmatmul.mubr.bf16.vlgmr.msra.gmra.mrb[12].mxu1 %v5380_v15 }
 0x349   : > { %v3034_v33 = vpop.f32.mrb[4].mxu0 }
 0x34a   : > { %v3075_v35 = vpop.f32.mrb[4].mxu1  ;;  %v3036_v36 = vpop.f32.mrb[5].mxu0 }
 0x34b   : > { %v3076_v37 = vadd.f32 %v3075_v35, %v3034_v33  ;;  %v3077_v38 = vpop.f32.mrb[5].mxu1  ;;  %v3038_v12 = vpop.f32.mrb[6].mxu0 }
 0x34c   : > { %v3078_v39 = vadd.f32 %v3077_v38, %v3036_v36  ;;  %v3079_v40 = vpop.f32.mrb[6].mxu1  ;;  %v3039_v41 = vpop.f32.mrb[7].mxu0 }
 0x34d   : > { %v3246_v42 = vadd.f32 %v3076_v37, %v1838_v34  ;;  %v3080_v43 = vpop.f32.mrb[7].mxu1 }
 0x34e   : > { %v3247_v44 = vadd.f32 %v3078_v39, %v1839_v9 }
 0x34f   : > { %3252 = vst [vmem:[#allocation2] sm:$0xff] %v3246_v42 }
 0x350   : > { %3253 = vst [vmem:[#allocation2 + $0x8] sm:$0xff] %v3247_v44 }
 0x356   : > { %v3262_v7 = vld [vmem:[#allocation2] sm:$0xff] (!%p3851_p12) }
 0x357   : > { %v3263_v10 = vld [vmem:[#allocation2 + $0x8] sm:$0xff] (!%p3851_p12)  ;;  %v3300_v31 = vadd.f32 (!%p3851_p12), %v3273_v19, %v3262_v7 }
 0x358   : > { %v3301_v32 = vadd.f32 (!%p3851_p12), %v3277_v22, %v3263_v10 }
 0x359   : > { %3306 = vst [vmem:[#allocation12] sm:$0xff] (!%p3851_p12), %v3300_v31 }
 0x35a   : > { %3307 = vst [vmem:[#allocation12 + $0x8] sm:$0xff] (!%p3851_p12), %v3301_v32 }
 0x389   : > { %v3116_v45 = vpop.f32.mrb[8].mxu0 }
 0x38a   : > { %v3157_v46 = vpop.f32.mrb[8].mxu1  ;;  %v3118_v15 = vpop.f32.mrb[9].mxu0 }
 0x38b   : > { %v3158_v47 = vadd.f32 %v3157_v46, %v3116_v45  ;;  %v3159_v49 = vpop.f32.mrb[9].mxu1  ;;  %v3120_v50 = vpop.f32.mrb[10].mxu0 }
 0x38c   : > { %v3160_v51 = vadd.f32 %v3159_v49, %v3118_v15  ;;  %v3161_v52 = vpop.f32.mrb[10].mxu1  ;;  %v3121_v53 = vpop.f32.mrb[11].mxu0 }
 0x38d   : > { %v3248_v54 = vadd.f32 %v3158_v47, %v1840_v14  ;;  %v3162_v55 = vpop.f32.mrb[11].mxu1 }
 0x38e   : > { %v3249_v56 = vadd.f32 %v3160_v51, %v1841_v48 }
 0x38f   : > { %3254 = vst [vmem:[#allocation2 + $0x10] sm:$0xff] %v3248_v54 }
 0x390   : > { %3255 = vst [vmem:[#allocation2 + $0x18] sm:$0xff] %v3249_v56 }
 0x396   : > { %v3264_v23 = vld [vmem:[#allocation2 + $0x10] sm:$0xff] (!%p3851_p12) }
 0x397   : > { %v3265_v25 = vld [vmem:[#allocation2 + $0x18] sm:$0xff] (!%p3851_p12)  ;;  %v3302_v33 = vadd.f32 (!%p3851_p12), %v3281_v24, %v3264_v23 }
 0x398   : > { %v3303_v34 = vadd.f32 (!%p3851_p12), %v3285_v26, %v3265_v25 }
 0x399   : > { %3308 = vst [vmem:[#allocation12 + $0x10] sm:$0xff] (!%p3851_p12), %v3302_v33 }
 0x39a   : > { %3309 = vst [vmem:[#allocation12 + $0x18] sm:$0xff] (!%p3851_p12), %v3303_v34 }
 0x3c9   : > { %v3198_v57 = vpop.f32.mrb[12].mxu0 }
 0x3ca   : > { %v3239_v59 = vpop.f32.mrb[12].mxu1  ;;  %v3200_v60 = vpop.f32.mrb[13].mxu0  ;;  %3261 = sbr.rel (%p3851_p12) target bundleno = 987 (0x3db), region = 68 }
 0x3cb   : > { %v3240_v61 = vadd.f32 %v3239_v59, %v3198_v57  ;;  %v3241_v63 = vpop.f32.mrb[13].mxu1  ;;  %v3202_v0 = vpop.f32.mrb[14].mxu0 }
 0x3cc   : > { %v3242_v1 = vadd.f32 %v3241_v63, %v3200_v60  ;;  %v3243_v2 = vpop.f32.mrb[14].mxu1  ;;  %v3203_v3 = vpop.f32.mrb[15].mxu0 }
 0x3cd   : > { %v3250_v4 = vadd.f32 %v3240_v61, %v1842_v58  ;;  %v3244_v5 = vpop.f32.mrb[15].mxu1 }
 0x3ce   : > { %v3251_v6 = vadd.f32 %v3242_v1, %v1843_v62 }
 0x3cf   : > { %3256 = vst [vmem:[#allocation2 + $0x20] sm:$0xff] %v3250_v4 }
 0x3d0   : > { %3257 = vst [vmem:[#allocation2 + $0x28] sm:$0xff] %v3251_v6 }
 0x3d6   : > { %v3266_v27 = vld [vmem:[#allocation2 + $0x20] sm:$0xff] }
 0x3d7   : > { %v3267_v29 = vld [vmem:[#allocation2 + $0x28] sm:$0xff]  ;;  %v3304_v17 = vadd.f32 %v3289_v28, %v3266_v27 }
 0x3d8   : > { %v3305_v35 = vadd.f32 %v3293_v30, %v3267_v29 }
 0x3d9   : > { %3310 = vst [vmem:[#allocation12 + $0x20] sm:$0xff] %v3304_v17 }
 0x3da   : > { %3311 = vst [vmem:[#allocation12 + $0x28] sm:$0xff] %v3305_v35 }
 0x3db PF: > { %p3922_p11 = scmp.eq.s32.totalorder %s4876_s24, 5  ;;  %s4816_s13 = smov [#allocation12]  }
 0x3dc   : > { %s3322_s8 = sshll.u32 %s4816_s13, 4  ;;  %s3323_s8 = int_to_ptr.vmem [resolvable:$true] %s3322_s8 }
 0x3dd   : > { %s4711_s16 = scalar_lea.vmem %s3323_s8, 768  ;;  %p4718_p6 = scmp.lt.s32.totalorder %s3323_s8, %s3323_s8 }
 0x3de   : > { %p4712_p0 = scmp.ne.s32.totalorder %s3323_s8, %s4711_s16  ;;  %p4719_p8 = scmp.lt.s32.totalorder %s4711_s16, %s4711_s16 }
 0x3e0   : > { %p4713_p7 = pnand %p4712_p0, %p3922_p11  ;;  %p4720_p13 = por %p4719_p8, %p4718_p6 }
 0x3e2   : > { %p4714_p10 = pneg %p4713_p7 }
 0x3e4   : > { %p4721_p3 = pnand %p4720_p13, %p4714_p10 }
 0x3e6   : > { %4724 = shalt.err (!%p4721_p3)
}
 0x3e7   : > { %s5618_s10 = sld [smem:[#allocation23_spill]] }
 0x3ed   : > { %s4725_s30 = scalar_lea.hbm %s5618_s10, 768 }
 0x3ee   : > { %p4726_p1 = scmp.ne.s32.totalorder %s5618_s10, %s4725_s30  ;;  %p4731_p5 = scmp.lt.u32.totalorder %s4725_s30, %s5618_s10 }
 0x3f0   : > { %p4727_p4 = pnand %p4726_p1, %p3922_p11 }
 0x3f2   : > { %p4728_p9 = pneg %p4727_p4 }
 0x3f4   : > { %p4733_p2 = pnand %p4731_p5, %p4728_p9 }
 0x3f6   : > { %4736 = shalt.err (!%p4733_p2)
}
 0x3f7   : > { %3897 = dma.vmem_to_hbm [thread:$0]  (%p3922_p11), %s3323_s8, 768, %s5618_s10, [#allocation5]  }
 0x3f8   : > { %4778 = dma.done.wait (%p3922_p11), [#allocation5], 768  }
 0x3f9   : > { %4780 = vsyncadd (%p3922_p11), [#allocation5], 4294966528 }
 0x3fa PF: > { %s23_s23 = sadd.s32 1, %s4803_s23   ;;  %s5619_s4 = sld [smem:[#allocation20_spill]] }
 0x3fb   : > { %p20_p12 = scmp.ge.s32.totalorder %s23_s23, 8   ;;  %s5620_s14 = sld [smem:[#allocation19_spill]] }
 0x3fc   : > { %s5621_s18 = smov %s4787_s19  ;;  %s5622_s19 = smov %s4791_s20 }
 0x3fd   : > { %s5624_s21 = smov %s4799_s22  ;;  %22 = sbr.rel (!%p20_p12) target bundleno = 12 (0xc), region = 120 }
 0x400   : > { %s5623_s20 = smov %s5619_s4 }
 0x401   : > { %s5625_s22 = smov %s5620_s14 }
 0x404   :  { %3335 = vsyncpa [#allocation4], 1 }
 0x405   :  { %3337 = vsyncpa [#allocation4 + $0x1], 1 }
 0x406   :  { %3338 = vsyncpa [#allocation7], 1 }
 0x407   :  { %3340 = vsyncpa [#allocation7 + $0x1], 1 }
 0x408   :  { %3341 = vsyncpa [#allocation10], 1 }
 0x409   :  { %3343 = vsyncpa [#allocation10 + $0x1], 1 }
 0x40a   :  { %3344 = vsyncpa [#allocation5], 1 }
 0x40b   :  { %3346 = vsyncpa [#allocation5 + $0x1], 1 }

</bundles_post_ra>
